<compile_context>
chip_gen: v7x
topology: tpu7x:2x2x1
jax: 0.10.0
libtpu: 0.0.40
codegen_flags: <defaults>
</compile_context>

<pallas_src>
import numpy as np
import jax
import jax.numpy as jnp
from jax.experimental import pallas as pl
from jax.experimental.pallas import tpu as pltpu

LATENT = 2
IMG = 16
IN_FEATS = 1 * IMG * IMG       # 256  (x, NCHW-flattened)
ENC1_FEATS = 8 * 8 * 8         # 512  (conv1 out)
ENC2_FEATS = 16 * 4 * 4        # 256  (conv2 out / head in)
DEC1_FEATS = 16 * 4 * 4        # 256  (dec_fc out)
DEC2_FEATS = 8 * 8 * 8         # 512  (convT1 out)
OUT_FEATS = 1 * IMG * IMG      # 256  (convT2 out)


def _round_up(x, m):
    return (x + m - 1) // m * m


# --------------------------------------------------------------------------
# Single fused Pallas kernel: encoder + sampling + decoder
# --------------------------------------------------------------------------
def _vae_fused_kernel(x_ref, eps_ref,
                      w1_ref, b1_ref, w2_ref, b2_ref,
                      wh_ref, bh_ref, wfc_ref, bfc_ref,
                      wd1_ref, bd1_ref, wd2_ref, bd2_ref,
                      out_ref, mean_ref, logvar_ref):
    f32 = jnp.float32
    bf16 = jnp.bfloat16

    # ---- encoder: conv1 / conv2 as dense Toeplitz matmuls (MXU, f32 acc)
    x = x_ref[...].astype(bf16)
    h1 = jnp.dot(x, w1_ref[...], preferred_element_type=f32) + b1_ref[...]
    h1 = jnp.maximum(h1, 0.0).astype(bf16)
    h2 = jnp.dot(h1, w2_ref[...], preferred_element_type=f32) + b2_ref[...]
    h2 = jnp.maximum(h2, 0.0).astype(bf16)

    # ---- fused z_mean / z_log_var head (one concatenated weight)
    zmv = jnp.dot(h2, wh_ref[...], preferred_element_type=f32) + bh_ref[...]
    z_mean = zmv[:, :LATENT]
    z_log_var = zmv[:, LATENT:]
    mean_ref[...] = z_mean
    logvar_ref[...] = z_log_var

    # ---- reparameterization (stays in VMEM; lane-sparse z never hits HBM)
    z = z_mean + jnp.exp(0.5 * z_log_var) * eps_ref[...]

    # ---- decoder fc: contraction dim is LATENT=2 -> VPU rank-2 update
    d1 = (bfc_ref[...]
          + z[:, 0:1] * wfc_ref[0:1, :]
          + z[:, 1:2] * wfc_ref[1:2, :])
    d1 = jnp.maximum(d1, 0.0).astype(bf16)

    # ---- decoder convT1 / convT2 as dense Toeplitz matmuls
    d2 = jnp.dot(d1, wd1_ref[...], preferred_element_type=f32) + bd1_ref[...]
    d2 = jnp.maximum(d2, 0.0).astype(bf16)
    d3 = jnp.dot(d2, wd2_ref[...], preferred_element_type=f32) + bd2_ref[...]

    # exact sigmoid: exp + reciprocal both land on the EUP slot
    out_ref[...] = pl.reciprocal(1.0 + jnp.exp(-d3), approx=False)


def _pick_rows(n):
    """Row tiling: one fully fused step at small N; >=2 parallel 256-row
    tiles for large batches (pipelining + v7x 2-TensorCore sharding)."""
    n_pad = _round_up(n, 8)
    if n_pad <= 256:
        return n_pad, n_pad
    tm = 256
    return _round_up(n, tm), tm


def vae_forward(prep, x, eps):
    n = x.shape[0]
    x_flat = x.reshape(n, IN_FEATS)          # NCHW flatten (C=1: pure reshape)
    n_pad, tm = _pick_rows(n)
    if n_pad != n:
        x_flat = jnp.pad(x_flat, ((0, n_pad - n), (0, 0)))
        eps = jnp.pad(eps, ((0, n_pad - n), (0, 0)))

    row = lambda i: (i, 0)
    fix = lambda i: (0, 0)
    wspec = lambda a: pl.BlockSpec(a.shape, fix)   # weight resident in VMEM

    out_flat, z_mean, z_log_var = pl.pallas_call(
        _vae_fused_kernel,
        out_shape=(jax.ShapeDtypeStruct((n_pad, OUT_FEATS), jnp.float32),
                   jax.ShapeDtypeStruct((n_pad, LATENT), jnp.float32),
                   jax.ShapeDtypeStruct((n_pad, LATENT), jnp.float32)),
        grid=(n_pad // tm,),
        in_specs=[pl.BlockSpec((tm, IN_FEATS), row),     # x rows (streamed)
                  pl.BlockSpec((tm, LATENT), row),       # eps rows
                  wspec(prep["w1"]), wspec(prep["b1"]),
                  wspec(prep["w2"]), wspec(prep["b2"]),
                  wspec(prep["wh"]), wspec(prep["bh"]),
                  wspec(prep["wfc"]), wspec(prep["bfc"]),
                  wspec(prep["wd1"]), wspec(prep["bd1"]),
                  wspec(prep["wd2"]), wspec(prep["bd2"])],
        out_specs=(pl.BlockSpec((tm, OUT_FEATS), row),   # lane-dense image out
                   pl.BlockSpec((tm, LATENT), row),
                   pl.BlockSpec((tm, LATENT), row)),
        compiler_params=pltpu.CompilerParams(
            dimension_semantics=("parallel",)),
    )(x_flat, eps,
      prep["w1"], prep["b1"], prep["w2"], prep["b2"],
      prep["wh"], prep["bh"], prep["wfc"], prep["bfc"],
      prep["wd1"], prep["bd1"], prep["wd2"], prep["bd2"])

    out = out_flat[:n].reshape(n, 1, IMG, IMG)
    return out, z_mean[:n], z_log_var[:n]


# --------------------------------------------------------------------------
# One-time parameter preparation: fold convs into dense Toeplitz matrices
# --------------------------------------------------------------------------
def _conv2d_toeplitz(w, H, W, stride, padding):
    """Dense T s.t. NCHW-flat Conv2d output = x_flat @ T (exact)."""
    w = np.asarray(w, np.float32)
    OC, IC, k, _ = w.shape
    OH = (H + 2 * padding - k) // stride + 1
    OW = (W + 2 * padding - k) // stride + 1
    T = np.zeros((IC * H * W, OC * OH * OW), np.float32)
    for oc in range(OC):
        for oh in range(OH):
            for ow in range(OW):
                o = (oc * OH + oh) * OW + ow
                for ic in range(IC):
                    for ky in range(k):
                        ih = oh * stride - padding + ky
                        if ih < 0 or ih >= H:
                            continue
                        for kx in range(k):
                            iw = ow * stride - padding + kx
                            if iw < 0 or iw >= W:
                                continue
                            T[(ic * H + ih) * W + iw, o] += w[oc, ic, ky, kx]
    return T, OH, OW


def _convt2d_toeplitz(w, H, W, stride, padding, output_padding):
    """Dense T for torch ConvTranspose2d (weight layout (IC, OC, k, k))."""
    w = np.asarray(w, np.float32)
    IC, OC, k, _ = w.shape
    OH = (H - 1) * stride - 2 * padding + k + output_padding
    OW = (W - 1) * stride - 2 * padding + k + output_padding
    T = np.zeros((IC * H * W, OC * OH * OW), np.float32)
    for ic in range(IC):
        for ih in range(H):
            for iw in range(W):
                i = (ic * H + ih) * W + iw
                for oc in range(OC):
                    for ky in range(k):
                        oh = ih * stride - padding + ky
                        if oh < 0 or oh >= OH:
                            continue
                        for kx in range(k):
                            ow = iw * stride - padding + kx
                            if ow < 0 or ow >= OW:
                                continue
                            T[i, (oc * OH + oh) * OW + ow] += w[ic, oc, ky, kx]
    return T, OH, OW


def init_params(key):
    ks = jax.random.split(key, 14)

    def w(k, shape, scale=0.1):
        return scale * jax.random.normal(k, shape, jnp.float32)

    return {
        "enc_conv1_w": w(ks[0], (8, 1, 3, 3)),
        "enc_conv1_b": w(ks[1], (8,), 0.05),
        "enc_conv2_w": w(ks[2], (16, 8, 3, 3)),
        "enc_conv2_b": w(ks[3], (16,), 0.05),
        "enc_mean_w": w(ks[4], (ENC2_FEATS, LATENT)),
        "enc_mean_b": w(ks[5], (LATENT,), 0.05),
        "enc_logvar_w": w(ks[6], (ENC2_FEATS, LATENT)),
        "enc_logvar_b": w(ks[7], (LATENT,), 0.05),
        "dec_fc_w": w(ks[8], (LATENT, DEC1_FEATS)),
        "dec_fc_b": w(ks[9], (DEC1_FEATS,), 0.05),
        "dec_convt1_w": w(ks[10], (16, 8, 3, 3)),   # (IC, OC, k, k)
        "dec_convt1_b": w(ks[11], (8,), 0.05),
        "dec_convt2_w": w(ks[12], (8, 1, 3, 3)),
        "dec_convt2_b": w(ks[13], (1,), 0.05),
    }


def prepare_params(p):
    """Fold convs/conv-transposes into dense Toeplitz matrices (bf16),
    concatenate the z_mean/z_log_var head, broadcast conv biases over the
    flattened (oc, oh, ow) output axis."""
    def bf(a):
        return jnp.asarray(a, jnp.bfloat16)

    def cbias(b, spatial):
        return jnp.asarray(np.repeat(np.asarray(b, np.float32), spatial)[None, :])

    w1, oh1, ow1 = _conv2d_toeplitz(p["enc_conv1_w"], IMG, IMG, 2, 1)
    w2, oh2, ow2 = _conv2d_toeplitz(p["enc_conv2_w"], oh1, ow1, 2, 1)
    wd1, dh1, dw1 = _convt2d_toeplitz(p["dec_convt1_w"], 4, 4, 2, 1, 1)
    wd2, dh2, dw2 = _convt2d_toeplitz(p["dec_convt2_w"], dh1, dw1, 2, 1, 1)
    assert w1.shape == (IN_FEATS, ENC1_FEATS)
    assert w2.shape == (ENC1_FEATS, ENC2_FEATS)
    assert wd1.shape == (DEC1_FEATS, DEC2_FEATS)
    assert wd2.shape == (DEC2_FEATS, OUT_FEATS)

    wh = jnp.concatenate([p["enc_mean_w"], p["enc_logvar_w"]], axis=1)
    bh = jnp.concatenate([p["enc_mean_b"], p["enc_logvar_b"]])[None, :]

    return {
        "w1": bf(w1), "b1": cbias(p["enc_conv1_b"], oh1 * ow1),
        "w2": bf(w2), "b2": cbias(p["enc_conv2_b"], oh2 * ow2),
        "wh": bf(wh), "bh": bh.astype(jnp.float32),
        "wfc": p["dec_fc_w"].astype(jnp.float32),   # (2, 256): VPU rank-2 update
        "bfc": p["dec_fc_b"][None, :].astype(jnp.float32),
        "wd1": bf(wd1), "bd1": cbias(p["dec_convt1_b"], dh1 * dw1),
        "wd2": bf(wd2), "bd2": cbias(p["dec_convt2_b"], dh2 * dw2),
    }


# --------------------------------------------------------------------------
# Pure-JAX f32 reference (original conv/convT formulation) for validation
# --------------------------------------------------------------------------
def _ref_conv2d(x, w, b, stride, padding):
    N, IC, H, W = x.shape
    OC, _, k, _ = w.shape
    xp = jnp.pad(x, ((0, 0), (0, 0), (padding, padding), (padding, padding)))
    OH = (H + 2 * padding - k) // stride + 1
    OW = (W + 2 * padding - k) // stride + 1
    taps = []
    for ky in range(k):
        for kx in range(k):
            taps.append(xp[:, :, ky:ky + stride * (OH - 1) + 1:stride,
                              kx:kx + stride * (OW - 1) + 1:stride])
    col = jnp.stack(taps, axis=2).reshape(N, IC * k * k, OH * OW)
    w2 = w.reshape(OC, IC * k * k)
    out = jnp.einsum("ok,nkm->nom", w2, col) + b[None, :, None]
    return out.reshape(N, OC, OH, OW)


def _ref_convt2d(x, w, b, stride, padding, output_padding):
    N, IC, H, W = x.shape
    _, OC, k, _ = w.shape
    Hd, Wd = (H - 1) * stride + 1, (W - 1) * stride + 1
    xd = jnp.zeros((N, IC, Hd, Wd), x.dtype).at[:, :, ::stride, ::stride].set(x)
    lo = k - 1 - padding
    hi = k - 1 - padding + output_padding
    xp = jnp.pad(xd, ((0, 0), (0, 0), (lo, hi), (lo, hi)))
    w_dir = jnp.flip(w, (2, 3)).transpose(1, 0, 2, 3)
    return _ref_conv2d(xp, w_dir, b, stride=1, padding=0)


def _ref_forward(p, x, eps):
    n = x.shape[0]
    h = jax.nn.relu(_ref_conv2d(x, p["enc_conv1_w"], p["enc_conv1_b"], 2, 1))
    h = jax.nn.relu(_ref_conv2d(h, p["enc_conv2_w"], p["enc_conv2_b"], 2, 1))
    hf = h.reshape(n, -1)
    zm = hf @ p["enc_mean_w"] + p["enc_mean_b"]
    zv = hf @ p["enc_logvar_w"] + p["enc_logvar_b"]
    z = zm + jnp.exp(0.5 * zv) * eps
    d = jax.nn.relu(z @ p["dec_fc_w"] + p["dec_fc_b"]).reshape(n, 16, 4, 4)
    d = jax.nn.relu(_ref_convt2d(d, p["dec_convt1_w"], p["dec_convt1_b"], 2, 1, 1))
    out = jax.nn.sigmoid(
        _ref_convt2d(d, p["dec_convt2_w"], p["dec_convt2_b"], 2, 1, 1))
    return out, zm, zv


# --------------------------------------------------------------------------
if __name__ == "__main__":
    key = jax.random.PRNGKey(0)
    kx, keps, kp = jax.random.split(key, 3)

    N = 2
    x = jax.random.normal(kx, (N, 1, IMG, IMG), jnp.float32)
    # TODO(synk): torch.randn inside the Sampling layer is replaced by a
    # deterministic host-side epsilon fed to the fused reparameterization.
    eps = jax.random.normal(keps, (N, LATENT), jnp.float32)

    params = init_params(kp)
    prep = prepare_params(params)

    fwd = jax.jit(vae_forward)
    out, z_mean, z_log_var = fwd(prep, x, eps)
    jax.block_until_ready((out, z_mean, z_log_var))

    assert out.shape == (N, 1, IMG, IMG)
    assert z_mean.shape == (N, LATENT) and z_log_var.shape == (N, LATENT)
    assert bool(jnp.all(jnp.isfinite(out)))

    # Validate against the pure-JAX f32 conv/convT reference (bf16 tolerance).
    ref_out, ref_zm, ref_zv = _ref_forward(params, x, eps)
    assert float(jnp.max(jnp.abs(z_mean - ref_zm))) < 2e-2
    assert float(jnp.max(jnp.abs(z_log_var - ref_zv))) < 2e-2
    assert float(jnp.max(jnp.abs(out - ref_out))) < 2e-2

    print("KERNEL_OK")
</pallas_src>

<mosaic_0001>
module attributes {stable_mosaic.version = 11 : i64} {
  func.func @_vae_fused_kernel(%arg0: i32, %arg1: memref<8x256xf32, #tpu.memory_space<vmem>>, %arg2: memref<8x2xf32, #tpu.memory_space<vmem>>, %arg3: memref<256x512xbf16, #tpu.memory_space<vmem>>, %arg4: memref<1x512xf32, #tpu.memory_space<vmem>>, %arg5: memref<512x256xbf16, #tpu.memory_space<vmem>>, %arg6: memref<1x256xf32, #tpu.memory_space<vmem>>, %arg7: memref<256x4xbf16, #tpu.memory_space<vmem>>, %arg8: memref<1x4xf32, #tpu.memory_space<vmem>>, %arg9: memref<2x256xf32, #tpu.memory_space<vmem>>, %arg10: memref<1x256xf32, #tpu.memory_space<vmem>>, %arg11: memref<256x512xbf16, #tpu.memory_space<vmem>>, %arg12: memref<1x512xf32, #tpu.memory_space<vmem>>, %arg13: memref<512x256xbf16, #tpu.memory_space<vmem>>, %arg14: memref<1x256xf32, #tpu.memory_space<vmem>>, %arg15: memref<8x256xf32, #tpu.memory_space<vmem>>, %arg16: memref<8x2xf32, #tpu.memory_space<vmem>>, %arg17: memref<8x2xf32, #tpu.memory_space<vmem>>) attributes {dimension_semantics = [#tpu.dimension_semantics<parallel>], iteration_bounds = array<i64: 1>, scalar_prefetch = 0 : i64, scratch_operands = 0 : i64, tpu.core_type = #tpu.core_type<tc>, window_params = [{transform_indices = @transform_0, window_bounds = array<i64: 8, 256>}, {transform_indices = @transform_1, window_bounds = array<i64: 8, 2>}, {pipeline_mode = #tpu.pipeline_mode<synchronous>, transform_indices = @transform_2, window_bounds = array<i64: 256, 512>}, {pipeline_mode = #tpu.pipeline_mode<synchronous>, transform_indices = @transform_3, window_bounds = array<i64: 1, 512>}, {pipeline_mode = #tpu.pipeline_mode<synchronous>, transform_indices = @transform_4, window_bounds = array<i64: 512, 256>}, {pipeline_mode = #tpu.pipeline_mode<synchronous>, transform_indices = @transform_5, window_bounds = array<i64: 1, 256>}, {pipeline_mode = #tpu.pipeline_mode<synchronous>, transform_indices = @transform_6, window_bounds = array<i64: 256, 4>}, {pipeline_mode = #tpu.pipeline_mode<synchronous>, transform_indices = @transform_7, window_bounds = array<i64: 1, 4>}, {pipeline_mode = #tpu.pipeline_mode<synchronous>, transform_indices = @transform_8, window_bounds = array<i64: 2, 256>}, {pipeline_mode = #tpu.pipeline_mode<synchronous>, transform_indices = @transform_9, window_bounds = array<i64: 1, 256>}, {pipeline_mode = #tpu.pipeline_mode<synchronous>, transform_indices = @transform_10, window_bounds = array<i64: 256, 512>}, {pipeline_mode = #tpu.pipeline_mode<synchronous>, transform_indices = @transform_11, window_bounds = array<i64: 1, 512>}, {pipeline_mode = #tpu.pipeline_mode<synchronous>, transform_indices = @transform_12, window_bounds = array<i64: 512, 256>}, {pipeline_mode = #tpu.pipeline_mode<synchronous>, transform_indices = @transform_13, window_bounds = array<i64: 1, 256>}, {transform_indices = @transform_14, window_bounds = array<i64: 8, 256>}, {transform_indices = @transform_15, window_bounds = array<i64: 8, 2>}, {transform_indices = @transform_16, window_bounds = array<i64: 8, 2>}]} {
    %c0 = arith.constant 0 : index
    %c0_0 = arith.constant 0 : index
    %0 = vector.load %arg1[%c0, %c0_0] : memref<8x256xf32, #tpu.memory_space<vmem>>, vector<8x256xf32>
    %1 = arith.truncf %0 : vector<8x256xf32> to vector<8x256xbf16>
    %c0_1 = arith.constant 0 : index
    %c0_2 = arith.constant 0 : index
    %2 = vector.load %arg3[%c0_1, %c0_2] : memref<256x512xbf16, #tpu.memory_space<vmem>>, vector<256x512xbf16>
    %cst = arith.constant dense<0.000000e+00> : vector<8x512xf32>
    %3 = tpu.matmul %1, %2, %cst {dimension_numbers = #tpu.dot_dimension_numbers<[1], [0], [0], [1], [0, 0, 1, 1], [], []>} : vector<8x256xbf16>, vector<256x512xbf16>, vector<8x512xf32> -> vector<8x512xf32>
    %c0_3 = arith.constant 0 : index
    %c0_4 = arith.constant 0 : index
    %4 = vector.load %arg4[%c0_3, %c0_4] : memref<1x512xf32, #tpu.memory_space<vmem>>, vector<1x512xf32>
    %5 = vector.broadcast %4 : vector<1x512xf32> to vector<8x512xf32>
    %6 = arith.addf %3, %5 : vector<8x512xf32>
    %cst_5 = arith.constant 0.000000e+00 : f32
    %7 = vector.broadcast %cst_5 : f32 to vector<8x512xf32>
    %8 = arith.maximumf %6, %7 : vector<8x512xf32>
    %9 = arith.truncf %8 : vector<8x512xf32> to vector<8x512xbf16>
    %c0_6 = arith.constant 0 : index
    %c0_7 = arith.constant 0 : index
    %10 = vector.load %arg5[%c0_6, %c0_7] : memref<512x256xbf16, #tpu.memory_space<vmem>>, vector<512x256xbf16>
    %cst_8 = arith.constant dense<0.000000e+00> : vector<8x256xf32>
    %11 = tpu.matmul %9, %10, %cst_8 {dimension_numbers = #tpu.dot_dimension_numbers<[1], [0], [0], [1], [0, 0, 1, 1], [], []>} : vector<8x512xbf16>, vector<512x256xbf16>, vector<8x256xf32> -> vector<8x256xf32>
    %c0_9 = arith.constant 0 : index
    %c0_10 = arith.constant 0 : index
    %12 = vector.load %arg6[%c0_9, %c0_10] : memref<1x256xf32, #tpu.memory_space<vmem>>, vector<1x256xf32>
    %13 = vector.broadcast %12 : vector<1x256xf32> to vector<8x256xf32>
    %14 = arith.addf %11, %13 : vector<8x256xf32>
    %cst_11 = arith.constant 0.000000e+00 : f32
    %15 = vector.broadcast %cst_11 : f32 to vector<8x256xf32>
    %16 = arith.maximumf %14, %15 : vector<8x256xf32>
    %17 = arith.truncf %16 : vector<8x256xf32> to vector<8x256xbf16>
    %c0_12 = arith.constant 0 : index
    %c0_13 = arith.constant 0 : index
    %18 = vector.load %arg7[%c0_12, %c0_13] : memref<256x4xbf16, #tpu.memory_space<vmem>>, vector<256x4xbf16>
    %cst_14 = arith.constant dense<0.000000e+00> : vector<8x4xf32>
    %19 = tpu.matmul %17, %18, %cst_14 {dimension_numbers = #tpu.dot_dimension_numbers<[1], [0], [0], [1], [0, 0, 1, 1], [], []>} : vector<8x256xbf16>, vector<256x4xbf16>, vector<8x4xf32> -> vector<8x4xf32>
    %c0_15 = arith.constant 0 : index
    %c0_16 = arith.constant 0 : index
    %20 = vector.load %arg8[%c0_15, %c0_16] : memref<1x4xf32, #tpu.memory_space<vmem>>, vector<1x4xf32>
    %21 = vector.broadcast %20 : vector<1x4xf32> to vector<8x4xf32>
    %22 = arith.addf %19, %21 : vector<8x4xf32>
    %23 = vector.extract_strided_slice %22 {offsets = [0, 0], sizes = [8, 2], strides = [1, 1]} : vector<8x4xf32> to vector<8x2xf32>
    %24 = vector.extract_strided_slice %22 {offsets = [0, 2], sizes = [8, 2], strides = [1, 1]} : vector<8x4xf32> to vector<8x2xf32>
    %c0_17 = arith.constant 0 : index
    %c0_18 = arith.constant 0 : index
    %25 = vector.load %arg16[%c0_17, %c0_18] : memref<8x2xf32, #tpu.memory_space<vmem>>, vector<8x2xf32>
    tpu.vector_store %arg16[%c0_17, %c0_18], %23 {strides = array<i32>} : memref<8x2xf32, #tpu.memory_space<vmem>>, vector<8x2xf32>,
    %c0_19 = arith.constant 0 : index
    %c0_20 = arith.constant 0 : index
    %26 = vector.load %arg17[%c0_19, %c0_20] : memref<8x2xf32, #tpu.memory_space<vmem>>, vector<8x2xf32>
    tpu.vector_store %arg17[%c0_19, %c0_20], %24 {strides = array<i32>} : memref<8x2xf32, #tpu.memory_space<vmem>>, vector<8x2xf32>,
    %cst_21 = arith.constant 5.000000e-01 : f32
    %27 = vector.broadcast %cst_21 : f32 to vector<8x2xf32>
    %28 = arith.mulf %27, %24 : vector<8x2xf32>
    %29 = math.exp %28 : vector<8x2xf32>
    %c0_22 = arith.constant 0 : index
    %c0_23 = arith.constant 0 : index
    %30 = vector.load %arg2[%c0_22, %c0_23] : memref<8x2xf32, #tpu.memory_space<vmem>>, vector<8x2xf32>
    %31 = arith.mulf %29, %30 : vector<8x2xf32>
    %32 = arith.addf %23, %31 : vector<8x2xf32>
    %c0_24 = arith.constant 0 : index
    %c0_25 = arith.constant 0 : index
    %33 = vector.load %arg10[%c0_24, %c0_25] : memref<1x256xf32, #tpu.memory_space<vmem>>, vector<1x256xf32>
    %34 = vector.extract_strided_slice %32 {offsets = [0, 0], sizes = [8, 1], strides = [1, 1]} : vector<8x2xf32> to vector<8x1xf32>
    %c0_26 = arith.constant 0 : index
    %c0_27 = arith.constant 0 : index
    %35 = vector.load %arg9[%c0_26, %c0_27] : memref<2x256xf32, #tpu.memory_space<vmem>>, vector<1x256xf32>
    %36 = vector.broadcast %34 : vector<8x1xf32> to vector<8x256xf32>
    %37 = vector.broadcast %35 : vector<1x256xf32> to vector<8x256xf32>
    %38 = arith.mulf %36, %37 : vector<8x256xf32>
    %39 = vector.broadcast %33 : vector<1x256xf32> to vector<8x256xf32>
    %40 = arith.addf %39, %38 : vector<8x256xf32>
    %41 = vector.extract_strided_slice %32 {offsets = [0, 1], sizes = [8, 1], strides = [1, 1]} : vector<8x2xf32> to vector<8x1xf32>
    %c1 = arith.constant 1 : index
    %c0_28 = arith.constant 0 : index
    %42 = vector.load %arg9[%c1, %c0_28] : memref<2x256xf32, #tpu.memory_space<vmem>>, vector<1x256xf32>
    %43 = vector.broadcast %41 : vector<8x1xf32> to vector<8x256xf32>
    %44 = vector.broadcast %42 : vector<1x256xf32> to vector<8x256xf32>
    %45 = arith.mulf %43, %44 : vector<8x256xf32>
    %46 = arith.addf %40, %45 : vector<8x256xf32>
    %cst_29 = arith.constant 0.000000e+00 : f32
    %47 = vector.broadcast %cst_29 : f32 to vector<8x256xf32>
    %48 = arith.maximumf %46, %47 : vector<8x256xf32>
    %49 = arith.truncf %48 : vector<8x256xf32> to vector<8x256xbf16>
    %c0_30 = arith.constant 0 : index
    %c0_31 = arith.constant 0 : index
    %50 = vector.load %arg11[%c0_30, %c0_31] : memref<256x512xbf16, #tpu.memory_space<vmem>>, vector<256x512xbf16>
    %cst_32 = arith.constant dense<0.000000e+00> : vector<8x512xf32>
    %51 = tpu.matmul %49, %50, %cst_32 {dimension_numbers = #tpu.dot_dimension_numbers<[1], [0], [0], [1], [0, 0, 1, 1], [], []>} : vector<8x256xbf16>, vector<256x512xbf16>, vector<8x512xf32> -> vector<8x512xf32>
    %c0_33 = arith.constant 0 : index
    %c0_34 = arith.constant 0 : index
    %52 = vector.load %arg12[%c0_33, %c0_34] : memref<1x512xf32, #tpu.memory_space<vmem>>, vector<1x512xf32>
    %53 = vector.broadcast %52 : vector<1x512xf32> to vector<8x512xf32>
    %54 = arith.addf %51, %53 : vector<8x512xf32>
    %cst_35 = arith.constant 0.000000e+00 : f32
    %55 = vector.broadcast %cst_35 : f32 to vector<8x512xf32>
    %56 = arith.maximumf %54, %55 : vector<8x512xf32>
    %57 = arith.truncf %56 : vector<8x512xf32> to vector<8x512xbf16>
    %c0_36 = arith.constant 0 : index
    %c0_37 = arith.constant 0 : index
    %58 = vector.load %arg13[%c0_36, %c0_37] : memref<512x256xbf16, #tpu.memory_space<vmem>>, vector<512x256xbf16>
    %cst_38 = arith.constant dense<0.000000e+00> : vector<8x256xf32>
    %59 = tpu.matmul %57, %58, %cst_38 {dimension_numbers = #tpu.dot_dimension_numbers<[1], [0], [0], [1], [0, 0, 1, 1], [], []>} : vector<8x512xbf16>, vector<512x256xbf16>, vector<8x256xf32> -> vector<8x256xf32>
    %c0_39 = arith.constant 0 : index
    %c0_40 = arith.constant 0 : index
    %60 = vector.load %arg14[%c0_39, %c0_40] : memref<1x256xf32, #tpu.memory_space<vmem>>, vector<1x256xf32>
    %61 = vector.broadcast %60 : vector<1x256xf32> to vector<8x256xf32>
    %62 = arith.addf %59, %61 : vector<8x256xf32>
    %cst_41 = arith.constant 0.000000e+00 : f32
    %63 = vector.broadcast %cst_41 : f32 to vector<8x256xf32>
    %64 = arith.subf %63, %62 : vector<8x256xf32>
    %65 = math.exp %64 : vector<8x256xf32>
    %cst_42 = arith.constant 1.000000e+00 : f32
    %66 = vector.broadcast %cst_42 : f32 to vector<8x256xf32>
    %67 = arith.addf %66, %65 : vector<8x256xf32>
    %68 = tpu.reciprocal %67 : vector<8x256xf32> -> vector<8x256xf32>
    %c0_43 = arith.constant 0 : index
    %c0_44 = arith.constant 0 : index
    %69 = vector.load %arg15[%c0_43, %c0_44] : memref<8x256xf32, #tpu.memory_space<vmem>>, vector<8x256xf32>
    tpu.vector_store %arg15[%c0_43, %c0_44], %68 {strides = array<i32>} : memref<8x256xf32, #tpu.memory_space<vmem>>, vector<8x256xf32>,
    return
  }
  func.func @transform_0(%arg0: i32) -> (i32, i32) {
    %c0_i32 = arith.constant 0 : i32
    %c0_i32_0 = arith.constant 0 : i32
    return %arg0, %c0_i32 : i32, i32
  }
  func.func @transform_1(%arg0: i32) -> (i32, i32) {
    %c0_i32 = arith.constant 0 : i32
    %c0_i32_0 = arith.constant 0 : i32
    return %arg0, %c0_i32 : i32, i32
  }
  func.func @transform_2(%arg0: i32) -> (i32, i32) {
    %c0_i32 = arith.constant 0 : i32
    %c0_i32_0 = arith.constant 0 : i32
    %c0_i32_1 = arith.constant 0 : i32
    return %c0_i32, %c0_i32_0 : i32, i32
  }
  func.func @transform_3(%arg0: i32) -> (i32, i32) {
    %c0_i32 = arith.constant 0 : i32
    %c0_i32_0 = arith.constant 0 : i32
    %c0_i32_1 = arith.constant 0 : i32
    return %c0_i32, %c0_i32_0 : i32, i32
  }
  func.func @transform_4(%arg0: i32) -> (i32, i32) {
    %c0_i32 = arith.constant 0 : i32
    %c0_i32_0 = arith.constant 0 : i32
    %c0_i32_1 = arith.constant 0 : i32
    return %c0_i32, %c0_i32_0 : i32, i32
  }
  func.func @transform_5(%arg0: i32) -> (i32, i32) {
    %c0_i32 = arith.constant 0 : i32
    %c0_i32_0 = arith.constant 0 : i32
    %c0_i32_1 = arith.constant 0 : i32
    return %c0_i32, %c0_i32_0 : i32, i32
  }
  func.func @transform_6(%arg0: i32) -> (i32, i32) {
    %c0_i32 = arith.constant 0 : i32
    %c0_i32_0 = arith.constant 0 : i32
    %c0_i32_1 = arith.constant 0 : i32
    return %c0_i32, %c0_i32_0 : i32, i32
  }
  func.func @transform_7(%arg0: i32) -> (i32, i32) {
    %c0_i32 = arith.constant 0 : i32
    %c0_i32_0 = arith.constant 0 : i32
    %c0_i32_1 = arith.constant 0 : i32
    return %c0_i32, %c0_i32_0 : i32, i32
  }
  func.func @transform_8(%arg0: i32) -> (i32, i32) {
    %c0_i32 = arith.constant 0 : i32
    %c0_i32_0 = arith.constant 0 : i32
    %c0_i32_1 = arith.constant 0 : i32
    return %c0_i32, %c0_i32_0 : i32, i32
  }
  func.func @transform_9(%arg0: i32) -> (i32, i32) {
    %c0_i32 = arith.constant 0 : i32
    %c0_i32_0 = arith.constant 0 : i32
    %c0_i32_1 = arith.constant 0 : i32
    return %c0_i32, %c0_i32_0 : i32, i32
  }
  func.func @transform_10(%arg0: i32) -> (i32, i32) {
    %c0_i32 = arith.constant 0 : i32
    %c0_i32_0 = arith.constant 0 : i32
    %c0_i32_1 = arith.constant 0 : i32
    return %c0_i32, %c0_i32_0 : i32, i32
  }
  func.func @transform_11(%arg0: i32) -> (i32, i32) {
    %c0_i32 = arith.constant 0 : i32
    %c0_i32_0 = arith.constant 0 : i32
    %c0_i32_1 = arith.constant 0 : i32
    return %c0_i32, %c0_i32_0 : i32, i32
  }
  func.func @transform_12(%arg0: i32) -> (i32, i32) {
    %c0_i32 = arith.constant 0 : i32
    %c0_i32_0 = arith.constant 0 : i32
    %c0_i32_1 = arith.constant 0 : i32
    return %c0_i32, %c0_i32_0 : i32, i32
  }
  func.func @transform_13(%arg0: i32) -> (i32, i32) {
    %c0_i32 = arith.constant 0 : i32
    %c0_i32_0 = arith.constant 0 : i32
    %c0_i32_1 = arith.constant 0 : i32
    return %c0_i32, %c0_i32_0 : i32, i32
  }
  func.func @transform_14(%arg0: i32) -> (i32, i32) {
    %c0_i32 = arith.constant 0 : i32
    %c0_i32_0 = arith.constant 0 : i32
    return %arg0, %c0_i32 : i32, i32
  }
  func.func @transform_15(%arg0: i32) -> (i32, i32) {
    %c0_i32 = arith.constant 0 : i32
    %c0_i32_0 = arith.constant 0 : i32
    return %arg0, %c0_i32 : i32, i32
  }
  func.func @transform_16(%arg0: i32) -> (i32, i32) {
    %c0_i32 = arith.constant 0 : i32
    %c0_i32_0 = arith.constant 0 : i32
    return %arg0, %c0_i32 : i32, i32
  }
}

</mosaic_0001>

<bundles_post_ra>
// kernel: vae_forward.1
= control target key start
LH: loop header
LB: loop body
LE: loop exit
PB: predicated region body
PF: predicated region fallthrough
CT: control target
= control target key end

     0   :  { %s3487_s0 = inlined_call_operand.vmem [shape: f32[8,256], index: 0, kind: input, shape index: {}]   ;;  %s3488_s1 = inlined_call_operand.vmem [shape: f32[8,2], index: 1, kind: input, shape index: {}]   ;;  %s3489_s2 = inlined_call_operand.hbm [shape: bf16[256,512], index: 2, kind: input, shape index: {}]   ;;  %s3490_s3 = inlined_call_operand.vmem [shape: f32[1,512], index: 3, kind: input, shape index: {}]   ;;  %s3491_s4 = inlined_call_operand.hbm [shape: bf16[512,256], index: 4, kind: input, shape index: {}]   ;;  %s3492_s5 = inlined_call_operand.vmem [shape: f32[1,256], index: 5, kind: input, shape index: {}]   ;;  %s3493_s6 = inlined_call_operand.vmem [shape: bf16[256,4], index: 6, kind: input, shape index: {}]   ;;  %s3494_s7 = inlined_call_operand.vmem [shape: f32[1,4], index: 7, kind: input, shape index: {}]   ;;  %s3495_s8 = inlined_call_operand.vmem [shape: f32[2,256], index: 8, kind: input, shape index: {}]   ;;  %s3496_s9 = inlined_call_operand.vmem [shape: f32[1,256], index: 9, kind: input, shape index: {}]   ;;  %s3497_s10 = inlined_call_operand.hbm [shape: bf16[256,512], index: 10, kind: input, shape index: {}]   ;;  %s3498_s11 = inlined_call_operand.vmem [shape: f32[1,512], index: 11, kind: input, shape index: {}]   ;;  %s3499_s12 = inlined_call_operand.hbm [shape: bf16[512,256], index: 12, kind: input, shape index: {}]   ;;  %s3500_s13 = inlined_call_operand.vmem [shape: f32[1,256], index: 13, kind: input, shape index: {}]   ;;  %s3501_s14 = inlined_call_operand.vmem [shape: f32[8,256], index: 14, kind: output, shape index: {0}]   ;;  %s3502_s15 = inlined_call_operand.vmem [shape: f32[8,2], index: 15, kind: output, shape index: {1}]   ;;  %s3503_s16 = inlined_call_operand.vmem [shape: f32[8,2], index: 16, kind: output, shape index: {2}]  }
   0x1   :  { %3507 = sst [smem:[#allocation12_spill]] %s3487_s0 }
   0x2   :  { %22 = vsyncpa [#allocation3], 0 }
   0x3   :  { %23 = vsyncpa [#allocation5], 0 }
   0x4   :  { %24 = vsyncpa [#allocation8], 0  ;;  %s3170_s21 = smov [#allocation4]   ;;  %s3076_s25 = scalar_lea.hbm %s3491_s4, 8192 }
   0x5   :  { %s48_s22 = sshll.u32 %s3170_s21, 4  ;;  %p3077_p0 = scmp.ne.s32.totalorder %s3491_s4, %s3076_s25  ;;  %s49_s22 = int_to_ptr.vmem [resolvable:$true] %s48_s22 }
   0x6   :  { %p3080_p1 = scmp.lt.u32.totalorder %s3076_s25, %s3491_s4 }
   0x8   :  { %p3082_p2 = pnand %p3080_p1, %p3077_p0 }
   0xa   :  { %3085 = shalt.err (!%p3082_p2)
}
   0xb   :  { %s3086_s30 = scalar_lea.vmem %s49_s22, 8192  ;;  %p3091_p4 = scmp.lt.s32.totalorder %s49_s22, %s49_s22 }
   0xc   :  { %p3087_p3 = scmp.ne.s32.totalorder %s49_s22, %s3086_s30  ;;  %p3092_p5 = scmp.lt.s32.totalorder %s3086_s30, %s3086_s30 }
   0xe   :  { %p3093_p6 = por %p3092_p5, %p3091_p4 }
  0x10   :  { %p3094_p7 = pnand %p3093_p6, %p3087_p3 }
  0x12   :  { %3097 = shalt.err (!%p3094_p7)
}
  0x13   :  { %s3505_s0 = smov 128   ;;  %s3506_s17 = smov 8  }
  0x14   :  { %54 = dma.hbm_to_vmem [thread:$0]  %s3491_s4, 8192, %s49_s22, [#allocation5], %s3505_s0, %s3505_s0, %s3506_s17  }
  0x15   :  { %s3173_s20 = smov [#allocation2]   ;;  %s3098_s25 = scalar_lea.hbm %s3489_s2, 8192 }
  0x16   :  { %s34_s21 = sshll.u32 %s3173_s20, 4  ;;  %p3099_p8 = scmp.ne.s32.totalorder %s3489_s2, %s3098_s25  ;;  %s35_s21 = int_to_ptr.vmem [resolvable:$true] %s34_s21 }
  0x17   :  { %p3102_p9 = scmp.lt.u32.totalorder %s3098_s25, %s3489_s2 }
  0x19   :  { %p3104_p10 = pnand %p3102_p9, %p3099_p8 }
  0x1b   :  { %3107 = shalt.err (!%p3104_p10)
}
  0x1c   :  { %s3108_s30 = scalar_lea.vmem %s35_s21, 8192  ;;  %p3113_p12 = scmp.lt.s32.totalorder %s35_s21, %s35_s21 }
  0x1d   :  { %p3109_p11 = scmp.ne.s32.totalorder %s35_s21, %s3108_s30  ;;  %p3114_p13 = scmp.lt.s32.totalorder %s3108_s30, %s3108_s30 }
  0x1f   :  { %p3115_p0 = por %p3114_p13, %p3113_p12 }
  0x21   :  { %p3116_p1 = pnand %p3115_p0, %p3109_p11 }
  0x23   :  { %3119 = shalt.err (!%p3116_p1)
}
  0x24   :  { %s3174_s4 = smov 256   ;;  %s3175_s22 = smov 16  }
  0x25   :  { %40 = dma.hbm_to_vmem [thread:$0]  %s3489_s2, 8192, %s35_s21, [#allocation3], %s3174_s4, %s3174_s4, %s3175_s22  }
  0x26   :  { %s3176_s20 = smov [#allocation6]   ;;  %s3177_s24 = smov [#allocation7]  }
  0x27   :  { %s70_s23 = sshll.u32 %s3176_s20, 4  ;;  %s84_s26 = sshll.u32 %s3177_s24, 4  ;;  %s71_s23 = int_to_ptr.vmem [resolvable:$true] %s70_s23  ;;  %s3294_s26 = int_to_ptr.vmem [resolvable:$true] %s84_s26 }
  0x28   :  { %s3120_s28 = scalar_lea.hbm %s3497_s10, 8192 }
  0x29   :  { %p3121_p2 = scmp.ne.s32.totalorder %s3497_s10, %s3120_s28  ;;  %p3124_p3 = scmp.lt.u32.totalorder %s3120_s28, %s3497_s10 }
  0x2b   :  { %p3126_p4 = pnand %p3124_p3, %p3121_p2 }
  0x2d   :  { %3129 = shalt.err (!%p3126_p4)
}
  0x2e   :  { %s3130_s2 = scalar_lea.vmem %s71_s23, 8192  ;;  %p3135_p6 = scmp.lt.s32.totalorder %s71_s23, %s71_s23 }
  0x2f   :  { %p3131_p5 = scmp.ne.s32.totalorder %s71_s23, %s3130_s2  ;;  %p3136_p7 = scmp.lt.s32.totalorder %s3130_s2, %s3130_s2 }
  0x31   :  { %p3137_p8 = por %p3136_p7, %p3135_p6 }
  0x33   :  { %p3138_p9 = pnand %p3137_p8, %p3131_p5 }
  0x35   :  { %3141 = shalt.err (!%p3138_p9)
}
  0x36   :  { %76 = dma.hbm_to_vmem [thread:$0]  %s3497_s10, 8192, %s71_s23, [#allocation5], %s3174_s4, %s3174_s4, %s3175_s22  }
  0x37   :  { %s3142_s24 = scalar_lea.hbm %s3499_s12, 8192 }
  0x38   :  { %p3143_p10 = scmp.ne.s32.totalorder %s3499_s12, %s3142_s24  ;;  %p3146_p11 = scmp.lt.u32.totalorder %s3142_s24, %s3499_s12 }
  0x3a   :  { %p3148_p12 = pnand %p3146_p11, %p3143_p10 }
  0x3c   :  { %3151 = shalt.err (!%p3148_p12)
}
  0x3d   :  { %s3152_s28 = scalar_lea.vmem %s3294_s26, 8192  ;;  %p3157_p0 = scmp.lt.s32.totalorder %s3294_s26, %s3294_s26 }
  0x3e   :  { %p3153_p13 = scmp.ne.s32.totalorder %s3294_s26, %s3152_s28  ;;  %p3158_p1 = scmp.lt.s32.totalorder %s3152_s28, %s3152_s28 }
  0x40   :  { %p3159_p2 = por %p3158_p1, %p3157_p0 }
  0x42   :  { %p3160_p3 = pnand %p3159_p2, %p3153_p13 }
  0x44   :  { %3163 = shalt.err (!%p3160_p3)
}
  0x45   :  { %s3508_s10 = smov 8   ;;  %s3509_s4 = smov 128  }
  0x46   :  { %90 = dma.hbm_to_vmem [thread:$0]  %s3499_s12, 8192, %s3294_s26, [#allocation8], %s3509_s4, %s3509_s4, %s3508_s10  }
  0x47   :  { %3164 = dma.done.wait [#allocation3], 8192  }
  0x48   :  { %3165 = vsyncadd [#allocation3], 4294959104 }
  0x49   :  { %3166 = dma.done.wait [#allocation5], 16384  }
  0x4a   :  { %3167 = vsyncadd [#allocation5], 4294950912 }
  0x4b   :  { %3168 = dma.done.wait [#allocation8], 8192  }
  0x4c   :  { %3169 = vsyncadd [#allocation8], 4294959104  ;;  %v2666_v0 = vld [vmem:[#allocation2 + $0x4] ss:$16 sps:$4 sm:$0xff]   ;;  %v2668_v1 = vld [vmem:[#allocation2] ss:$16 sps:$4 sm:$0xff]  }
  0x4d   :  { %516 = vmatprep.subr.bf16.mxu1 %v2666_v0  ;;  %v2669_v2 = vld [vmem:[#allocation2 + $0x24] ss:$16 sps:$4 sm:$0xff]   ;;  %v2671_v3 = vld [vmem:[#allocation2 + $0x20] ss:$16 sps:$4 sm:$0xff]   ;;  %s3510_s29 = sld [smem:[#allocation12_spill]]  ;;  %vm1263_vm0 = vcmask 15360  }
  0x4e   :  { %517 = vmatpush1.bf16.msra.mxu1 %v2668_v1  ;;  %v2672_v4 = vld [vmem:[#allocation2 + $0x44] ss:$16 sps:$4 sm:$0xff]   ;;  %v2674_v5 = vld [vmem:[#allocation2 + $0x40] ss:$16 sps:$4 sm:$0xff]   ;;  %v2716_v45 = vld [vmem:[#allocation2 + $0xc] ss:$16 sps:$4 sm:$0xff]  }
  0x4f   :  { %518 = vmatprep.subr.bf16.mxu1 %v2669_v2  ;;  %v2675_v6 = vld [vmem:[#allocation2 + $0x64] ss:$16 sps:$4 sm:$0xff]   ;;  %v2677_v7 = vld [vmem:[#allocation2 + $0x60] ss:$16 sps:$4 sm:$0xff]   ;;  %v2714_v47 = vld [vmem:[#allocation2 + $0x8] ss:$16 sps:$4 sm:$0xff]  }
  0x50   :  { %v2678_v8 = vld [vmem:[#allocation2 + $0x84] ss:$16 sps:$4 sm:$0xff]   ;;  %v2680_v9 = vld [vmem:[#allocation2 + $0x80] ss:$16 sps:$4 sm:$0xff]   ;;  %v2719_v49 = vld [vmem:[#allocation2 + $0x2c] ss:$16 sps:$4 sm:$0xff]  }
  0x51   :  { %v2681_v10 = vld [vmem:[#allocation2 + $0xa4] ss:$16 sps:$4 sm:$0xff]   ;;  %v2683_v11 = vld [vmem:[#allocation2 + $0xa0] ss:$16 sps:$4 sm:$0xff]   ;;  %v2717_v52 = vld [vmem:[#allocation2 + $0x28] ss:$16 sps:$4 sm:$0xff]  }
  0x52   :  { %519 = vmatpush1.bf16.msra.mxu1 %v2671_v3  ;;  %v2684_v12 = vld [vmem:[#allocation2 + $0xc4] ss:$16 sps:$4 sm:$0xff]   ;;  %v2686_v15 = vld [vmem:[#allocation2 + $0xc0] ss:$16 sps:$4 sm:$0xff]   ;;  %v2722_v53 = vld [vmem:[#allocation2 + $0x4c] ss:$16 sps:$4 sm:$0xff]  }
  0x53   :  { %520 = vmatprep.subr.bf16.mxu1 %v2672_v4  ;;  %v107_v13 = vld [vmem:[%s3510_s29 + $0x8] sm:$0xff]  ;;  %v2687_v16 = vld [vmem:[#allocation2 + $0xe4] ss:$16 sps:$4 sm:$0xff]   ;;  %v2689_v17 = vld [vmem:[#allocation2 + $0xe0] ss:$16 sps:$4 sm:$0xff]  }
  0x54   :  { %v3331_v14 = vpack.c.bf16 %v107_v13, %v107_v13  ;;  %v2690_v18 = vld [vmem:[#allocation2 + $0x104] ss:$16 sps:$4 sm:$0xff]   ;;  %v2692_v19 = vld [vmem:[#allocation2 + $0x100] ss:$16 sps:$4 sm:$0xff]   ;;  %v2720_v56 = vld [vmem:[#allocation2 + $0x48] ss:$16 sps:$4 sm:$0xff]  }
  0x55   :  { %v2693_v20 = vld [vmem:[#allocation2 + $0x124] ss:$16 sps:$4 sm:$0xff]   ;;  %v2695_v21 = vld [vmem:[#allocation2 + $0x120] ss:$16 sps:$4 sm:$0xff]   ;;  %v2725_v57 = vld [vmem:[#allocation2 + $0x6c] ss:$16 sps:$4 sm:$0xff]  }
  0x56   :  { %521 = vmatpush1.bf16.msra.mxu1 %v2674_v5  ;;  %548 = vmatprep.mubr.bf16.mxu1 %v3331_v14  ;;  %v2696_v22 = vld [vmem:[#allocation2 + $0x144] ss:$16 sps:$4 sm:$0xff]   ;;  %v2698_v23 = vld [vmem:[#allocation2 + $0x140] ss:$16 sps:$4 sm:$0xff]   ;;  %v2723_v60 = vld [vmem:[#allocation2 + $0x68] ss:$16 sps:$4 sm:$0xff]  }
  0x57   :  { %522 = vmatprep.subr.bf16.mxu1 %v2675_v6  ;;  %v2699_v24 = vld [vmem:[#allocation2 + $0x164] ss:$16 sps:$4 sm:$0xff]   ;;  %v2701_v25 = vld [vmem:[#allocation2 + $0x160] ss:$16 sps:$4 sm:$0xff]   ;;  %v2728_v61 = vld [vmem:[#allocation2 + $0x8c] ss:$16 sps:$4 sm:$0xff]  }
  0x58   :  { %v2702_v26 = vld [vmem:[#allocation2 + $0x184] ss:$16 sps:$4 sm:$0xff]   ;;  %v2764_v28 = vld [vmem:[#allocation4] ss:$8 sps:$4 sm:$0xff]   ;;  %v2767_v31 = vld [vmem:[#allocation4 + $0x10] ss:$8 sps:$4 sm:$0xff]  }
  0x59   :  { %v2762_v27 = vld [vmem:[#allocation4 + $0x4] ss:$8 sps:$4 sm:$0xff]   ;;  %v2765_v29 = vld [vmem:[#allocation4 + $0x14] ss:$8 sps:$4 sm:$0xff]   ;;  %v2704_v30 = vld [vmem:[#allocation2 + $0x180] ss:$16 sps:$4 sm:$0xff]  }
  0x5a   :  { %523 = vmatpush1.bf16.msra.mxu1 %v2677_v7  ;;  %1002 = vmatprep.subr.bf16.mxu0 %v2762_v27  ;;  %v2705_v32 = vld [vmem:[#allocation2 + $0x1a4] ss:$16 sps:$4 sm:$0xff]   ;;  %v2707_v34 = vld [vmem:[#allocation2 + $0x1a0] ss:$16 sps:$4 sm:$0xff]   ;;  %v2726_v0 = vld [vmem:[#allocation2 + $0x88] ss:$16 sps:$4 sm:$0xff]  }
  0x5b   :  { %524 = vmatprep.subr.bf16.mxu1 %v2678_v8  ;;  %1003 = vmatpush1.bf16.msra.mxu0 %v2764_v28  ;;  %v2768_v33 = vld [vmem:[#allocation4 + $0x24] ss:$8 sps:$4 sm:$0xff]   ;;  %v2770_v35 = vld [vmem:[#allocation4 + $0x20] ss:$8 sps:$4 sm:$0xff]   ;;  %v2771_v37 = vld [vmem:[#allocation4 + $0x34] ss:$8 sps:$4 sm:$0xff]  }
  0x5c   :  { %1004 = vmatprep.subr.bf16.mxu0 %v2765_v29  ;;  %v2708_v36 = vld [vmem:[#allocation2 + $0x1c4] ss:$16 sps:$4 sm:$0xff]   ;;  %v2710_v38 = vld [vmem:[#allocation2 + $0x1c0] ss:$16 sps:$4 sm:$0xff]   ;;  %v2731_v1 = vld [vmem:[#allocation2 + $0xac] ss:$16 sps:$4 sm:$0xff]  }
  0x5d   :  { %v2773_v39 = vld [vmem:[#allocation4 + $0x30] ss:$8 sps:$4 sm:$0xff]   ;;  %v2711_v40 = vld [vmem:[#allocation2 + $0x1e4] ss:$16 sps:$4 sm:$0xff]   ;;  %v2776_v44 = vld [vmem:[#allocation4 + $0x40] ss:$8 sps:$4 sm:$0xff]  }
  0x5e   :  { %525 = vmatpush1.bf16.msra.mxu1 %v2680_v9  ;;  %v2774_v41 = vld [vmem:[#allocation4 + $0x44] ss:$8 sps:$4 sm:$0xff]   ;;  %v2713_v42 = vld [vmem:[#allocation2 + $0x1e0] ss:$16 sps:$4 sm:$0xff]   ;;  %v2777_v46 = vld [vmem:[#allocation4 + $0x54] ss:$8 sps:$4 sm:$0xff]  }
  0x5f   :  { %526 = vmatprep.subr.bf16.mxu1 %v2681_v10  ;;  %1005 = vmatpush1.bf16.msra.mxu0 %v2767_v31  ;;  %v106_v43 = vld [vmem:[%s3510_s29] sm:$0xff]  ;;  %v2779_v50 = vld [vmem:[#allocation4 + $0x50] ss:$8 sps:$4 sm:$0xff]   ;;  %v2783_v55 = vld [vmem:[#allocation4 + $0x74] ss:$8 sps:$4 sm:$0xff]   ;;  %s3178_s29 = smov 2  }
  0x60   :  { %1006 = vmatprep.subr.bf16.mxu0 %v2768_v33  ;;  %v3337_v48 = vpack.c.bf16 %v106_v43, %v106_v43  ;;  %v2780_v51 = vld [vmem:[#allocation4 + $0x64] ss:$8 sps:$4 sm:$0xff]   ;;  %v2782_v54 = vld [vmem:[#allocation4 + $0x60] ss:$8 sps:$4 sm:$0xff]   ;;  %v2785_v58 = vld [vmem:[#allocation4 + $0x70] ss:$8 sps:$4 sm:$0xff]  }
  0x61   :  { %v2786_v59 = vld [vmem:[#allocation4 + $0x84] ss:$8 sps:$4 sm:$0xff]   ;;  %v2788_v62 = vld [vmem:[#allocation4 + $0x80] ss:$8 sps:$4 sm:$0xff]   ;;  %v2789_v63 = vld [vmem:[#allocation4 + $0x94] ss:$8 sps:$4 sm:$0xff]  }
  0x62   :  { %527 = vmatpush1.bf16.msra.mxu1 %v2683_v11  ;;  %v2791_v2 = vld [vmem:[#allocation4 + $0x90] ss:$8 sps:$4 sm:$0xff]   ;;  %v2792_v3 = vld [vmem:[#allocation4 + $0xa4] ss:$8 sps:$4 sm:$0xff]   ;;  %v2794_v6 = vld [vmem:[#allocation4 + $0xa0] ss:$8 sps:$4 sm:$0xff]  }
  0x63   :  { %528 = vmatprep.subr.bf16.mxu1 %v2684_v12  ;;  %1007 = vmatpush1.bf16.msra.mxu0 %v2770_v35  ;;  %v2729_v4 = vld [vmem:[#allocation2 + $0xa8] ss:$16 sps:$4 sm:$0xff]   ;;  %v2734_v5 = vld [vmem:[#allocation2 + $0xcc] ss:$16 sps:$4 sm:$0xff]  }
  0x64   :  { %1008 = vmatprep.subr.bf16.mxu0 %v2771_v37  ;;  %v2795_v7 = vld [vmem:[#allocation4 + $0xb4] ss:$8 sps:$4 sm:$0xff]   ;;  %v2732_v8 = vld [vmem:[#allocation2 + $0xc8] ss:$16 sps:$4 sm:$0xff]   ;;  %v2798_v11 = vld [vmem:[#allocation4 + $0xc4] ss:$8 sps:$4 sm:$0xff]  }
  0x65   :  { %v2737_v9 = vld [vmem:[#allocation2 + $0xec] ss:$16 sps:$4 sm:$0xff]   ;;  %v2797_v10 = vld [vmem:[#allocation4 + $0xb0] ss:$8 sps:$4 sm:$0xff]   ;;  %v2806_v33 = vld [vmem:[#allocation4 + $0xe0] ss:$8 sps:$4 sm:$0xff]  }
  0x66   :  { %529 = vmatpush1.bf16.msra.mxu1 %v2686_v15  ;;  %v2735_v12 = vld [vmem:[#allocation2 + $0xe8] ss:$16 sps:$4 sm:$0xff]   ;;  %v2740_v13 = vld [vmem:[#allocation2 + $0x10c] ss:$16 sps:$4 sm:$0xff]   ;;  %v2858_v37 = vld [vmem:[%s3493_s6 + $0x40] sm:$0xff]  }
  0x67   :  { %530 = vmatprep.subr.bf16.mxu1 %v2687_v16  ;;  %1009 = vmatpush1.bf16.msra.mxu0 %v2773_v39  ;;  %v2801_v15 = vld [vmem:[#allocation4 + $0xd4] ss:$8 sps:$4 sm:$0xff]   ;;  %v2738_v16 = vld [vmem:[#allocation2 + $0x108] ss:$16 sps:$4 sm:$0xff]  }
  0x68   :  { %1010 = vmatprep.subr.bf16.mxu0 %v2774_v41  ;;  %v2753_v27 = vld [vmem:[#allocation2 + $0x1a8] ss:$16 sps:$4 sm:$0xff]   ;;  %v2758_v28 = vld [vmem:[#allocation2 + $0x1cc] ss:$16 sps:$4 sm:$0xff]   ;;  %v2862_v41 = vld [vmem:[%s3493_s6 + $0x50] sm:$0xff]  }
  0x69   :  { %v2756_v29 = vld [vmem:[#allocation2 + $0x1c8] ss:$16 sps:$4 sm:$0xff]  }
  0x6a   :  { %531 = vmatpush1.bf16.msra.mxu1 %v2689_v17  ;;  %v2743_v17 = vld [vmem:[#allocation2 + $0x12c] ss:$16 sps:$4 sm:$0xff]   ;;  %v2759_v31 = vld [vmem:[#allocation2 + $0x1e8] ss:$16 sps:$4 sm:$0xff]  }
  0x6b   :  { %532 = vmatprep.subr.bf16.mxu1 %v2690_v18  ;;  %1011 = vmatpush1.bf16.msra.mxu0 %v2776_v44  ;;  %v2803_v18 = vld [vmem:[#allocation4 + $0xd0] ss:$8 sps:$4 sm:$0xff]   ;;  %v2860_v39 = vld [vmem:[%s3493_s6 + $0x48] sm:$0xff]  }
  0x6c   :  { %1012 = vmatprep.subr.bf16.mxu0 %v2777_v46  ;;  %v2809_v35 = vld [vmem:[#allocation4 + $0xf0] ss:$8 sps:$4 sm:$0xff]   ;;  %v2867_v46 = vld [vmem:[%s3493_s6 + $0x20] sm:$0xff]  }
  0x6d   :  { %v2864_v43 = vld [vmem:[%s3493_s6 + $0x58] sm:$0xff]  }
  0x6e   :  { %533 = vmatpush1.bf16.msra.mxu1 %v2692_v19  ;;  %v2741_v19 = vld [vmem:[#allocation2 + $0x128] ss:$16 sps:$4 sm:$0xff]  }
  0x6f   :  { %534 = vmatprep.subr.bf16.mxu1 %v2693_v20  ;;  %1013 = vmatpush1.bf16.msra.mxu0 %v2779_v50  ;;  %v2746_v20 = vld [vmem:[#allocation2 + $0x14c] ss:$16 sps:$4 sm:$0xff]  }
  0x70   :  { %1014 = vmatprep.subr.bf16.mxu0 %v2780_v51  ;;  %v2865_v44 = vld [vmem:[%s3493_s6 + $0x18] sm:$0xff]  }
  0x72   :  { %535 = vmatpush1.bf16.msra.mxu1 %v2695_v21  ;;  %v2744_v21 = vld [vmem:[#allocation2 + $0x148] ss:$16 sps:$4 sm:$0xff]  }
  0x73   :  { %536 = vmatprep.subr.bf16.mxu1 %v2696_v22  ;;  %1015 = vmatpush1.bf16.msra.mxu0 %v2782_v54  ;;  %v2749_v22 = vld [vmem:[#allocation2 + $0x16c] ss:$16 sps:$4 sm:$0xff]  }
  0x74   :  { %1016 = vmatprep.subr.bf16.mxu0 %v2783_v55 }
  0x76   :  { %537 = vmatpush1.bf16.msra.mxu1 %v2698_v23  ;;  %v2747_v23 = vld [vmem:[#allocation2 + $0x168] ss:$16 sps:$4 sm:$0xff]  }
  0x77   :  { %538 = vmatprep.subr.bf16.mxu1 %v2699_v24  ;;  %1017 = vmatpush1.bf16.msra.mxu0 %v2785_v58  ;;  %v2752_v24 = vld [vmem:[#allocation2 + $0x18c] ss:$16 sps:$4 sm:$0xff]  }
  0x78   :  { %1018 = vmatprep.subr.bf16.mxu0 %v2786_v59 }
  0x7a   :  { %539 = vmatpush1.bf16.msra.mxu1 %v2701_v25  ;;  %v2750_v25 = vld [vmem:[#allocation2 + $0x188] ss:$16 sps:$4 sm:$0xff]  }
  0x7b   :  { %540 = vmatprep.subr.bf16.mxu1 %v2702_v26  ;;  %1019 = vmatpush1.bf16.msra.mxu0 %v2788_v62  ;;  %v2755_v26 = vld [vmem:[#allocation2 + $0x1ac] ss:$16 sps:$4 sm:$0xff]  }
  0x7c   :  { %1020 = vmatprep.subr.bf16.mxu0 %v2789_v63 }
  0x7e   :  { %541 = vmatpush1.bf16.msra.mxu1 %v2704_v30  ;;  %v2761_v30 = vld [vmem:[#allocation2 + $0x1ec] ss:$16 sps:$4 sm:$0xff]  }
  0x7f   :  { %542 = vmatprep.subr.bf16.mxu1 %v2705_v32  ;;  %1021 = vmatpush1.bf16.msra.mxu0 %v2791_v2  ;;  %v2804_v32 = vld [vmem:[#allocation4 + $0xe4] ss:$8 sps:$4 sm:$0xff]   ;;  %v2810_v2 = vld [vmem:[#allocation4 + $0x100] ss:$8 sps:$4 sm:$0xff]  }
  0x80   :  { %1022 = vmatprep.subr.bf16.mxu0 %v2792_v3  ;;  %v2815_v3 = vld [vmem:[#allocation4 + $0x114] ss:$8 sps:$4 sm:$0xff]  }
  0x82   :  { %543 = vmatpush1.bf16.msra.mxu1 %v2707_v34  ;;  %v2807_v34 = vld [vmem:[#allocation4 + $0xf4] ss:$8 sps:$4 sm:$0xff]  }
  0x83   :  { %544 = vmatprep.subr.bf16.mxu1 %v2708_v36  ;;  %1023 = vmatpush1.bf16.msra.mxu0 %v2794_v6  ;;  %v2812_v36 = vld [vmem:[#allocation4 + $0x104] ss:$8 sps:$4 sm:$0xff]   ;;  %v2816_v6 = vld [vmem:[#allocation4 + $0x120] ss:$8 sps:$4 sm:$0xff]  }
  0x84   :  { %1024 = vmatprep.subr.bf16.mxu0 %v2795_v7  ;;  %v2821_v7 = vld [vmem:[#allocation4 + $0x134] ss:$8 sps:$4 sm:$0xff]  }
  0x86   :  { %545 = vmatpush1.bf16.msra.mxu1 %v2710_v38  ;;  %v2859_v38 = vld [vmem:[%s3493_s6] sm:$0xff]  }
  0x87   :  { %546 = vmatprep.subr.bf16.mxu1 %v2711_v40  ;;  %1025 = vmatpush1.bf16.msra.mxu0 %v2797_v10  ;;  %v2861_v40 = vld [vmem:[%s3493_s6 + $0x8] sm:$0xff]  }
  0x88   :  { %1026 = vmatprep.subr.bf16.mxu0 %v2798_v11  ;;  %v2822_v10 = vld [vmem:[#allocation4 + $0x140] ss:$8 sps:$4 sm:$0xff]   ;;  %v2827_v11 = vld [vmem:[#allocation4 + $0x154] ss:$8 sps:$4 sm:$0xff]  }
  0x8a   :  { %547 = vmatpush1.bf16.msra.mxu1 %v2713_v42  ;;  %v2863_v42 = vld [vmem:[%s3493_s6 + $0x10] sm:$0xff]  }
  0x8b   :  { %557 = vmatprep.subr.bf16.mxu1 %v2716_v45  ;;  %v2866_v45 = vld [vmem:[%s3493_s6 + $0x60] sm:$0xff]  }
  0x8d   :  { %549 = vmatmul.mubr.bf16.vlgmr.msra.gmra.mrb[0].mxu1 %v3337_v48 }
  0x8e   :  { %558 = vmatpush1.bf16.msra.mxu1 %v2714_v47  ;;  %589 = vmatprep.mubr.bf16.mxu1 %v3331_v14  ;;  %v2800_v14 = vld [vmem:[#allocation4 + $0xc0] ss:$8 sps:$4 sm:$0xff]  }
  0x8f   :  { %559 = vmatprep.subr.bf16.mxu1 %v2719_v49  ;;  %1027 = vmatpush1.bf16.msra.mxu0 %v2800_v14  ;;  %v2868_v47 = vld [vmem:[%s3493_s6 + $0x68] sm:$0xff]   ;;  %v176_v49 = vlaneseq }
  0x90   :  { %1028 = vmatprep.subr.bf16.mxu0 %v2801_v15  ;;  %v2828_v14 = vld [vmem:[#allocation4 + $0x160] ss:$8 sps:$4 sm:$0xff]   ;;  %v2833_v15 = vld [vmem:[#allocation4 + $0x174] ss:$8 sps:$4 sm:$0xff]  }
  0x91   :  { %v3378_v50 = vshrl.u32 %v176_v49, 7  ;;  %v2872_v49 = vld [vmem:[%s3493_s6 + $0x78] sm:$0xff]  }
  0x92   :  { %560 = vmatpush1.bf16.msra.mxu1 %v2717_v52  ;;  %v3386_v52 = vld [vmem:[%s3490_s3] sm:$0xf] }
  0x93   :  { %561 = vmatprep.subr.bf16.mxu1 %v2722_v53  ;;  %1029 = vmatpush1.bf16.msra.mxu0 %v2803_v18  ;;  %v3381_v51 = vsub.s32 0, %v3378_v50  ;;  %v3389_v53 = vsub.s32 1, %v3378_v50  ;;  %v2834_v18 = vld [vmem:[#allocation4 + $0x180] ss:$8 sps:$4 sm:$0xff]  }
  0x94   :  { %1030 = vmatprep.subr.bf16.mxu0 %v2804_v32 }
  0x95   :  { %v179_v54 = vrot.slane %v3386_v52, %v3381_v51  ;;  %v183_v55 = vrot.slane %v3386_v52, %v3389_v53 }
  0x96   :  { %562 = vmatpush1.bf16.msra.mxu1 %v2720_v56 }
  0x97   :  { %563 = vmatprep.subr.bf16.mxu1 %v2725_v57  ;;  %1031 = vmatpush1.bf16.msra.mxu0 %v2806_v33 }
  0x98   :  { %1032 = vmatprep.subr.bf16.mxu0 %v2807_v34  ;;  %v2852_v34 = vld [vmem:[#allocation4 + $0x1e0] ss:$8 sps:$4 sm:$0xff]  }
  0x9a   :  { %564 = vmatpush1.bf16.msra.mxu1 %v2723_v60 }
  0x9b   :  { %565 = vmatprep.subr.bf16.mxu1 %v2728_v61  ;;  %1033 = vmatpush1.bf16.msra.mxu0 %v2809_v35  ;;  %v2857_v35 = vld [vmem:[#allocation4 + $0x1f4] ss:$8 sps:$4 sm:$0xff]  }
  0x9c   :  { %1043 = vmatprep.subr.bf16.mxu0 %v2812_v36 }
  0x9e   :  { %566 = vmatpush1.bf16.msra.mxu1 %v2726_v0 }
  0x9f   :  { %567 = vmatprep.subr.bf16.mxu1 %v2731_v1 }
  0xa2   :  { %568 = vmatpush1.bf16.msra.mxu1 %v2729_v4  ;;  %v2813_v4 = vld [vmem:[#allocation4 + $0x110] ss:$8 sps:$4 sm:$0xff]  }
  0xa3   :  { %569 = vmatprep.subr.bf16.mxu1 %v2734_v5  ;;  %v2818_v5 = vld [vmem:[#allocation4 + $0x124] ss:$8 sps:$4 sm:$0xff]  }
  0xa6   :  { %570 = vmatpush1.bf16.msra.mxu1 %v2732_v8  ;;  %v2819_v8 = vld [vmem:[#allocation4 + $0x130] ss:$8 sps:$4 sm:$0xff]  }
  0xa7   :  { %571 = vmatprep.subr.bf16.mxu1 %v2737_v9  ;;  %v2824_v9 = vld [vmem:[#allocation4 + $0x144] ss:$8 sps:$4 sm:$0xff]  }
  0xaa   :  { %572 = vmatpush1.bf16.msra.mxu1 %v2735_v12  ;;  %v2825_v12 = vld [vmem:[#allocation4 + $0x150] ss:$8 sps:$4 sm:$0xff]  }
  0xab   :  { %573 = vmatprep.subr.bf16.mxu1 %v2740_v13  ;;  %v2830_v13 = vld [vmem:[#allocation4 + $0x164] ss:$8 sps:$4 sm:$0xff]  }
  0xae   :  { %574 = vmatpush1.bf16.msra.mxu1 %v2738_v16  ;;  %v2831_v16 = vld [vmem:[#allocation4 + $0x170] ss:$8 sps:$4 sm:$0xff]  }
  0xaf   :  { %575 = vmatprep.subr.bf16.mxu1 %v2743_v17  ;;  %v2836_v17 = vld [vmem:[#allocation4 + $0x184] ss:$8 sps:$4 sm:$0xff]  }
  0xb2   :  { %576 = vmatpush1.bf16.msra.mxu1 %v2741_v19  ;;  %v2839_v19 = vld [vmem:[#allocation4 + $0x194] ss:$8 sps:$4 sm:$0xff]  }
  0xb3   :  { %577 = vmatprep.subr.bf16.mxu1 %v2746_v20  ;;  %v2837_v20 = vld [vmem:[#allocation4 + $0x190] ss:$8 sps:$4 sm:$0xff]  }
  0xb6   :  { %578 = vmatpush1.bf16.msra.mxu1 %v2744_v21  ;;  %v2842_v21 = vld [vmem:[#allocation4 + $0x1a4] ss:$8 sps:$4 sm:$0xff]  }
  0xb7   :  { %579 = vmatprep.subr.bf16.mxu1 %v2749_v22  ;;  %v2840_v22 = vld [vmem:[#allocation4 + $0x1a0] ss:$8 sps:$4 sm:$0xff]  }
  0xba   :  { %580 = vmatpush1.bf16.msra.mxu1 %v2747_v23  ;;  %v2845_v23 = vld [vmem:[#allocation4 + $0x1b4] ss:$8 sps:$4 sm:$0xff]  }
  0xbb   :  { %581 = vmatprep.subr.bf16.mxu1 %v2752_v24  ;;  %v2843_v24 = vld [vmem:[#allocation4 + $0x1b0] ss:$8 sps:$4 sm:$0xff]  }
  0xbe   :  { %582 = vmatpush1.bf16.msra.mxu1 %v2750_v25  ;;  %v2848_v25 = vld [vmem:[#allocation4 + $0x1c4] ss:$8 sps:$4 sm:$0xff]  }
  0xbf   :  { %583 = vmatprep.subr.bf16.mxu1 %v2755_v26  ;;  %v2846_v26 = vld [vmem:[#allocation4 + $0x1c0] ss:$8 sps:$4 sm:$0xff]  }
  0xc2   :  { %584 = vmatpush1.bf16.msra.mxu1 %v2753_v27  ;;  %v2851_v27 = vld [vmem:[#allocation4 + $0x1d4] ss:$8 sps:$4 sm:$0xff]  }
  0xc3   :  { %585 = vmatprep.subr.bf16.mxu1 %v2758_v28  ;;  %v186_v28 = vsub.s32 2, %v3378_v50 }
  0xc5   :  { %v187_v32 = vrot.slane %v3386_v52, %v186_v28 }
  0xc6   :  { %586 = vmatpush1.bf16.msra.mxu1 %v2756_v29  ;;  %v2849_v29 = vld [vmem:[#allocation4 + $0x1d0] ss:$8 sps:$4 sm:$0xff]  }
  0xc7   :  { %587 = vmatprep.subr.bf16.mxu1 %v2761_v30  ;;  %v190_v30 = vsub.s32 3, %v3378_v50  ;;  %v1902_v50 = vld [vmem:[%s3500_s13] sm:$0x3] }
  0xc9   :  { %v191_v33 = vrot.slane %v3386_v52, %v190_v30  ;;  %v2873_v52 = vld [vmem:[%s3493_s6 + $0x38] sm:$0xff]  }
  0xca   :  { %588 = vmatpush1.bf16.msra.mxu1 %v2759_v31  ;;  %v2854_v31 = vld [vmem:[#allocation4 + $0x1e4] ss:$8 sps:$4 sm:$0xff]  }
  0xcb   :  { %2617 = vmatprep.subr.bf16.mxu1 %v2858_v37 }
  0xcd   :  { %590 = vmatmul.mubr.bf16.vlgmr.msra.gmra.mrb[4].mxu1 %v3337_v48  ;;  %v2869_v48 = vld [vmem:[%s3493_s6 + $0x28] sm:$0xff]  }
  0xce   :  { %2618 = vmatpush3.bf16.msra.mxu1 %v2859_v38 }
  0xcf   :  { %2619 = vmatprep.subr.bf16.mxu1 %v2860_v39 }
  0xd2   :  { %2620 = vmatpush3.bf16.msra.mxu1 %v2861_v40 }
  0xd3   :  { %2621 = vmatprep.subr.bf16.mxu1 %v2862_v41  ;;  %v2855_v41 = vld [vmem:[#allocation4 + $0x1f0] ss:$8 sps:$4 sm:$0xff]  }
  0xd6   :  { %2622 = vmatpush3.bf16.msra.mxu1 %v2863_v42 }
  0xd7   :  { %2623 = vmatprep.subr.bf16.mxu1 %v2864_v43 }
  0xda   :  { %2624 = vmatpush3.bf16.msra.mxu1 %v2865_v44 }
  0xdb   :  { %2625 = vmatprep.subr.bf16.mxu1 %v2866_v45 }
  0xde   :  { %2626 = vmatpush3.bf16.msra.mxu1 %v2867_v46 }
  0xdf   :  { %2627 = vmatprep.subr.bf16.mxu1 %v2868_v47  ;;  %v2870_v47 = vld [vmem:[%s3493_s6 + $0x70] sm:$0xff]  }
  0xe2   :  { %2628 = vmatpush3.bf16.msra.mxu1 %v2869_v48  ;;  %v2871_v48 = vld [vmem:[%s3493_s6 + $0x30] sm:$0xff]  }
  0xe3   :  { %2629 = vmatprep.subr.bf16.mxu1 %v2870_v47 }
  0xe6   :  { %2630 = vmatpush3.bf16.msra.mxu1 %v2871_v48  ;;  %v2915_v48 = vld [vmem:[#allocation6 + $0x1a4] ss:$16 sps:$4 sm:$0xff]  }
  0xe7   :  { %2631 = vmatprep.subr.bf16.mxu1 %v2872_v49  ;;  %v2913_v49 = vld [vmem:[#allocation6 + $0x1a0] ss:$16 sps:$4 sm:$0xff]  }
  0xea   :  { %2632 = vmatpush3.bf16.msra.mxu1 %v2873_v52 }
 0x160   :  { %v550_v56 = vpop.f32.mrb[0].mxu1 }
 0x161   :  { %v551_v57 = vadd.f32 %v550_v56, %v179_v54  ;;  %v552_v58 = vpop.f32.mrb[1].mxu1  ;;  %v1273_v54 = vld [vmem:[%s3488_s1] sm:$0xff] }
 0x162   :  { %v553_v59 = vadd.f32 %v552_v58, %v183_v55  ;;  %v554_v60 = vpop.f32.mrb[2].mxu1  ;;  %1275 = vrot.lane.b32.xlu0 %v1273_v54, %s3178_s29  ;;  %v670_v55 = vld [vmem:[%s3492_s5] sm:$0x3]  ;;  %v2918_v54 = vld [vmem:[#allocation6 + $0x1c4] ss:$16 sps:$4 sm:$0xff]  }
 0x163   :  { %v598_v61 = vmax.f32 %v551_v57, 0.0  ;;  %v555_v62 = vpop.f32.mrb[3].mxu1  ;;  %v675_v56 = vrot.slane %v670_v55, %v3381_v51  ;;  %v679_v57 = vrot.slane %v670_v55, %v3389_v53  ;;  %v2916_v55 = vld [vmem:[#allocation6 + $0x1c0] ss:$16 sps:$4 sm:$0xff]  }
 0x164   :  { %v599_v63 = vmax.f32 %v553_v59, 0.0 }
 0x165   :  { %v602_v0 = vpack.c.bf16 %v598_v61, %v598_v61 }
 0x166   :  { %v603_v1 = vpack.c.bf16 %v599_v63, %v599_v63 }
 0x168   :  { %1034 = vmatprep.mubr.bf16.mxu0 %v603_v1 }
 0x169   :  { %1035 = vmatmul.mubr.bf16.vlgmr.msra.gmra.mrb[0].mxu0 %v602_v0 }
 0x16a   :  { %1044 = vmatpush1.bf16.msra.mxu0 %v2810_v2 }
 0x16b   :  { %1045 = vmatprep.subr.bf16.mxu0 %v2815_v3 }
 0x16e   :  { %1046 = vmatpush1.bf16.msra.mxu0 %v2813_v4 }
 0x16f   :  { %1047 = vmatprep.subr.bf16.mxu0 %v2818_v5  ;;  %v2471_v5 = vld [vmem:[%s3494_s7] ss:$0 sm:$0xff]  ;;  %s3181_s7 = smov 126  }
 0x172   :  { %1048 = vmatpush1.bf16.msra.mxu0 %v2816_v6 }
 0x173   :  { %1049 = vmatprep.subr.bf16.mxu0 %v2821_v7 }
 0x176   :  { %1050 = vmatpush1.bf16.msra.mxu0 %v2819_v8 }
 0x177   :  { %1051 = vmatprep.subr.bf16.mxu0 %v2824_v9 }
 0x17a   :  { %1052 = vmatpush1.bf16.msra.mxu0 %v2822_v10 }
 0x17b   :  { %1053 = vmatprep.subr.bf16.mxu0 %v2827_v11 }
 0x17e   :  { %1054 = vmatpush1.bf16.msra.mxu0 %v2825_v12 }
 0x17f   :  { %1055 = vmatprep.subr.bf16.mxu0 %v2830_v13  ;;  %v3179_v13 = vmov 0  }
 0x180   :  { %2663 = vset.pattern.permute.xlu1 %v3179_v13  ;;  %v2999_v13 = vld [vmem:[#allocation7 + $0x94] ss:$8 sps:$4 sm:$0xff]  }
 0x182   :  { %1056 = vmatpush1.bf16.msra.mxu0 %v2828_v14  ;;  %v3180_v14 = vmov 1  }
 0x183   :  { %1057 = vmatprep.subr.bf16.mxu0 %v2833_v15  ;;  %2665 = vset.pattern.permute.xlu0 %v3180_v14  ;;  %v2874_v15 = vld [vmem:[#allocation6] ss:$16 sps:$4 sm:$0xff]  }
 0x186   :  { %1058 = vmatpush1.bf16.msra.mxu0 %v2831_v16  ;;  %v2876_v16 = vld [vmem:[#allocation6 + $0x4] ss:$16 sps:$4 sm:$0xff]  }
 0x187   :  { %1059 = vmatprep.subr.bf16.mxu0 %v2836_v17  ;;  %1748 = vmatprep.subr.bf16.mxu1 %v2876_v16  ;;  %v3000_v16 = vld [vmem:[#allocation7 + $0xa0] ss:$8 sps:$4 sm:$0xff]  }
 0x18a   :  { %1060 = vmatpush1.bf16.msra.mxu0 %v2834_v18  ;;  %v2879_v18 = vld [vmem:[#allocation6 + $0x24] ss:$16 sps:$4 sm:$0xff]  }
 0x18b   :  { %1061 = vmatprep.subr.bf16.mxu0 %v2839_v19 }
 0x18e   :  { %1062 = vmatpush1.bf16.msra.mxu0 %v2837_v20  ;;  %v2877_v20 = vld [vmem:[#allocation6 + $0x20] ss:$16 sps:$4 sm:$0xff]  }
 0x18f   :  { %1063 = vmatprep.subr.bf16.mxu0 %v2842_v21 }
 0x192   :  { %1064 = vmatpush1.bf16.msra.mxu0 %v2840_v22  ;;  %v2882_v22 = vld [vmem:[#allocation6 + $0x44] ss:$16 sps:$4 sm:$0xff]  }
 0x193   :  { %1065 = vmatprep.subr.bf16.mxu0 %v2845_v23  ;;  %v2880_v23 = vld [vmem:[#allocation6 + $0x40] ss:$16 sps:$4 sm:$0xff]  }
 0x196   :  { %1066 = vmatpush1.bf16.msra.mxu0 %v2843_v24  ;;  %v2885_v24 = vld [vmem:[#allocation6 + $0x64] ss:$16 sps:$4 sm:$0xff]  }
 0x197   :  { %1067 = vmatprep.subr.bf16.mxu0 %v2848_v25  ;;  %v2883_v25 = vld [vmem:[#allocation6 + $0x60] ss:$16 sps:$4 sm:$0xff]  }
 0x19a   :  { %1068 = vmatpush1.bf16.msra.mxu0 %v2846_v26  ;;  %v2888_v26 = vld [vmem:[#allocation6 + $0x84] ss:$16 sps:$4 sm:$0xff]  }
 0x19b   :  { %1069 = vmatprep.subr.bf16.mxu0 %v2851_v27  ;;  %v2886_v27 = vld [vmem:[#allocation6 + $0x80] ss:$16 sps:$4 sm:$0xff]  }
 0x19e   :  { %1070 = vmatpush1.bf16.msra.mxu0 %v2849_v29  ;;  %v2891_v29 = vld [vmem:[#allocation6 + $0xa4] ss:$16 sps:$4 sm:$0xff]  }
 0x19f   :  { %1071 = vmatprep.subr.bf16.mxu0 %v2854_v31  ;;  %v2889_v31 = vld [vmem:[#allocation6 + $0xa0] ss:$16 sps:$4 sm:$0xff]  }
 0x1a0   :  { %v591_v36 = vpop.f32.mrb[4].mxu1 }
 0x1a1   :  { %v592_v37 = vadd.f32 %v591_v36, %v187_v32  ;;  %v593_v38 = vpop.f32.mrb[5].mxu1  ;;  %v2894_v32 = vld [vmem:[#allocation6 + $0xc4] ss:$16 sps:$4 sm:$0xff]  }
 0x1a2   :  { %v594_v39 = vadd.f32 %v593_v38, %v191_v33  ;;  %v595_v40 = vpop.f32.mrb[6].mxu1  ;;  %1072 = vmatpush1.bf16.msra.mxu0 %v2852_v34  ;;  %v2892_v33 = vld [vmem:[#allocation6 + $0xc0] ss:$16 sps:$4 sm:$0xff]   ;;  %v2897_v34 = vld [vmem:[#allocation6 + $0xe4] ss:$16 sps:$4 sm:$0xff]  }
 0x1a3   :  { %v600_v42 = vmax.f32 %v592_v37, 0.0  ;;  %v596_v43 = vpop.f32.mrb[7].mxu1  ;;  %1073 = vmatprep.subr.bf16.mxu0 %v2857_v35  ;;  %v2895_v35 = vld [vmem:[#allocation6 + $0xe0] ss:$16 sps:$4 sm:$0xff]   ;;  %v2900_v36 = vld [vmem:[#allocation6 + $0x104] ss:$16 sps:$4 sm:$0xff]  }
 0x1a4   :  { %v601_v44 = vmax.f32 %v594_v39, 0.0  ;;  %v2898_v37 = vld [vmem:[#allocation6 + $0x100] ss:$16 sps:$4 sm:$0xff]   ;;  %v2903_v38 = vld [vmem:[#allocation6 + $0x124] ss:$16 sps:$4 sm:$0xff]  }
 0x1a5   :  { %v604_v46 = vpack.c.bf16 %v600_v42, %v600_v42  ;;  %v2901_v39 = vld [vmem:[#allocation6 + $0x120] ss:$16 sps:$4 sm:$0xff]   ;;  %v2906_v40 = vld [vmem:[#allocation6 + $0x144] ss:$16 sps:$4 sm:$0xff]  }
 0x1a6   :  { %v605_v45 = vpack.c.bf16 %v601_v44, %v601_v44  ;;  %1074 = vmatpush1.bf16.msra.mxu0 %v2855_v41  ;;  %v2904_v41 = vld [vmem:[#allocation6 + $0x140] ss:$16 sps:$4 sm:$0xff]   ;;  %v2909_v42 = vld [vmem:[#allocation6 + $0x164] ss:$16 sps:$4 sm:$0xff]  }
 0x1a7   :  { %v2907_v43 = vld [vmem:[#allocation6 + $0x160] ss:$16 sps:$4 sm:$0xff]   ;;  %v2912_v44 = vld [vmem:[#allocation6 + $0x184] ss:$16 sps:$4 sm:$0xff]  }
 0x1a8   :  { %1075 = vmatprep.mubr.bf16.mxu0 %v605_v45  ;;  %v2910_v45 = vld [vmem:[#allocation6 + $0x180] ss:$16 sps:$4 sm:$0xff]  }
 0x1a9   :  { %1076 = vmatmul.mubr.bf16.vlgmr.msra.gmra.mrb[0].mxu0 %v604_v46 }
 0x1d4   :  { %v1276_v17 = vpop.permute.xlu0 %1275 }
 0x27c   :  { %v1077_v58 = vpop.f32.mrb[0].mxu0 }
 0x27d   :  { %v2639_v59 = vadd.f32 %v1077_v58, %v675_v56  ;;  %v1079_v60 = vpop.f32.mrb[1].mxu0  ;;  %v2921_v56 = vld [vmem:[#allocation6 + $0x1e4] ss:$16 sps:$4 sm:$0xff]   ;;  %v2924_v58 = vld [vmem:[#allocation6 + $0xc] ss:$16 sps:$4 sm:$0xff]  }
 0x27e   :  { %v2640_v61 = vadd.f32 %v1079_v60, %v679_v57  ;;  %v1081_v62 = vpop.f32.mrb[2].mxu0  ;;  %v2919_v57 = vld [vmem:[#allocation6 + $0x1e0] ss:$16 sps:$4 sm:$0xff]   ;;  %v2972_v60 = vld [vmem:[#allocation7 + $0x4] ss:$8 sps:$4 sm:$0xff]  }
 0x27f   :  { %v1084_v63 = vmax.f32 %v2639_v59, 0.0  ;;  %v1082_v0 = vpop.f32.mrb[3].mxu0  ;;  %v2970_v59 = vld [vmem:[#allocation7] ss:$8 sps:$4 sm:$0xff]   ;;  %2234 = vmatprep.subr.bf16.mxu0 %v2972_v60  ;;  %v2973_v62 = vld [vmem:[#allocation7 + $0x10] ss:$8 sps:$4 sm:$0xff]  }
 0x280   :  { %v1085_v1 = vmax.f32 %v2640_v61, 0.0  ;;  %v2975_v61 = vld [vmem:[#allocation7 + $0x14] ss:$8 sps:$4 sm:$0xff]   ;;  %2235 = vmatpush1.bf16.msra.mxu0 %v2970_v59  ;;  %v2976_v0 = vld [vmem:[#allocation7 + $0x20] ss:$8 sps:$4 sm:$0xff]  }
 0x281   :  { %v1086_v3 = vpack.c.bf16 %v1084_v63, %v1084_v63  ;;  %2236 = vmatprep.subr.bf16.mxu0 %v2975_v61  ;;  %v2978_v63 = vld [vmem:[#allocation7 + $0x24] ss:$8 sps:$4 sm:$0xff]   ;;  %v2934_v59 = vld [vmem:[#allocation6 + $0x88] ss:$16 sps:$4 sm:$0xff]  }
 0x282   :  { %v1087_v2 = vpack.c.bf16 %v1085_v1, %v1085_v1  ;;  %v2981_v1 = vld [vmem:[#allocation7 + $0x34] ss:$8 sps:$4 sm:$0xff]   ;;  %v2937_v61 = vld [vmem:[#allocation6 + $0xa8] ss:$16 sps:$4 sm:$0xff]  }
 0x283   :  { %v2939_v60 = vld [vmem:[#allocation6 + $0xac] ss:$16 sps:$4 sm:$0xff]  }
 0x284   :  { %1255 = vmatprep.mubr.bf16.mxu1 %v1087_v2  ;;  %2237 = vmatpush1.bf16.msra.mxu0 %v2973_v62  ;;  %v2979_v2 = vld [vmem:[#allocation7 + $0x30] ss:$8 sps:$4 sm:$0xff]   ;;  %v2942_v62 = vld [vmem:[#allocation6 + $0xcc] ss:$16 sps:$4 sm:$0xff]  }
 0x285   :  { %1256 = vmatmul.mubr.bf16.vlgmr.msra.gmra.mrb[8].mxu1 %v1086_v3  ;;  %2238 = vmatprep.subr.bf16.mxu0 %v2978_v63  ;;  %v2984_v3 = vld [vmem:[#allocation7 + $0x44] ss:$8 sps:$4 sm:$0xff]   ;;  %v2940_v63 = vld [vmem:[#allocation6 + $0xc8] ss:$16 sps:$4 sm:$0xff]  }
 0x286   :  { %1749 = vmatpush1.bf16.msra.mxu1 %v2874_v15  ;;  %v3002_v15 = vld [vmem:[#allocation7 + $0xa4] ss:$8 sps:$4 sm:$0xff]  }
 0x287   :  { %1750 = vmatprep.subr.bf16.mxu1 %v2879_v18  ;;  %v3003_v18 = vld [vmem:[#allocation7 + $0xb0] ss:$8 sps:$4 sm:$0xff]  }
 0x288   :  { %2239 = vmatpush1.bf16.msra.mxu0 %v2976_v0  ;;  %v2945_v0 = vld [vmem:[#allocation6 + $0xec] ss:$16 sps:$4 sm:$0xff]  }
 0x289   :  { %2240 = vmatprep.subr.bf16.mxu0 %v2981_v1  ;;  %v2943_v1 = vld [vmem:[#allocation6 + $0xe8] ss:$16 sps:$4 sm:$0xff]  }
 0x28a   :  { %1751 = vmatpush1.bf16.msra.mxu1 %v2877_v20  ;;  %v3008_v20 = vld [vmem:[#allocation7 + $0xc4] ss:$8 sps:$4 sm:$0xff]  }
 0x28b   :  { %1752 = vmatprep.subr.bf16.mxu1 %v2882_v22 }
 0x28c   :  { %2241 = vmatpush1.bf16.msra.mxu0 %v2979_v2  ;;  %v2948_v2 = vld [vmem:[#allocation6 + $0x10c] ss:$16 sps:$4 sm:$0xff]  }
 0x28d   :  { %2242 = vmatprep.subr.bf16.mxu0 %v2984_v3  ;;  %v2946_v3 = vld [vmem:[#allocation6 + $0x108] ss:$16 sps:$4 sm:$0xff]  }
 0x28e   :  { %1753 = vmatpush1.bf16.msra.mxu1 %v2880_v23 }
 0x28f   :  { %1754 = vmatprep.subr.bf16.mxu1 %v2885_v24  ;;  %v3006_v24 = vld [vmem:[#allocation7 + $0xc0] ss:$8 sps:$4 sm:$0xff]  }
 0x292   :  { %1755 = vmatpush1.bf16.msra.mxu1 %v2883_v25  ;;  %v2488_v25 = vld [vmem:[%s3495_s8 + $0x1] ss:$2 sm:$0x3] }
 0x293   :  { %1756 = vmatprep.subr.bf16.mxu1 %v2888_v26  ;;  %v3011_v26 = vld [vmem:[#allocation7 + $0xd4] ss:$8 sps:$4 sm:$0xff]  }
 0x296   :  { %1757 = vmatpush1.bf16.msra.mxu1 %v2886_v27 }
 0x297   :  { %1758 = vmatprep.subr.bf16.mxu1 %v2891_v29 }
 0x29a   :  { %1759 = vmatpush1.bf16.msra.mxu1 %v2889_v31 }
 0x29b   :  { %1760 = vmatprep.subr.bf16.mxu1 %v2894_v32 }
 0x29e   :  { %1761 = vmatpush1.bf16.msra.mxu1 %v2892_v33 }
 0x29f   :  { %1762 = vmatprep.subr.bf16.mxu1 %v2897_v34  ;;  %v1327_v34 = vrot.slane %v2488_v25, %v3381_v51 }
 0x2a2   :  { %1763 = vmatpush1.bf16.msra.mxu1 %v2895_v35  ;;  %v1331_v35 = vrot.slane %v2488_v25, %v3389_v53 }
 0x2a3   :  { %1764 = vmatprep.subr.bf16.mxu1 %v2900_v36  ;;  %v3009_v36 = vld [vmem:[#allocation7 + $0xd0] ss:$8 sps:$4 sm:$0xff]  }
 0x2a6   :  { %1765 = vmatpush1.bf16.msra.mxu1 %v2898_v37 }
 0x2a7   :  { %1766 = vmatprep.subr.bf16.mxu1 %v2903_v38 }
 0x2aa   :  { %1767 = vmatpush1.bf16.msra.mxu1 %v2901_v39 }
 0x2ab   :  { %1768 = vmatprep.subr.bf16.mxu1 %v2906_v40 }
 0x2ae   :  { %1769 = vmatpush1.bf16.msra.mxu1 %v2904_v41 }
 0x2af   :  { %1770 = vmatprep.subr.bf16.mxu1 %v2909_v42 }
 0x2b2   :  { %1771 = vmatpush1.bf16.msra.mxu1 %v2907_v43 }
 0x2b3   :  { %1772 = vmatprep.subr.bf16.mxu1 %v2912_v44 }
 0x2b6   :  { %1773 = vmatpush1.bf16.msra.mxu1 %v2910_v45 }
 0x2b7   :  { %1774 = vmatprep.subr.bf16.mxu1 %v2915_v48  ;;  %v2922_v48 = vld [vmem:[#allocation6 + $0x8] ss:$16 sps:$4 sm:$0xff]  }
 0x2ba   :  { %1775 = vmatpush1.bf16.msra.mxu1 %v2913_v49  ;;  %v2927_v49 = vld [vmem:[#allocation6 + $0x2c] ss:$16 sps:$4 sm:$0xff]  }
 0x2bb   :  { %1776 = vmatprep.subr.bf16.mxu1 %v2918_v54  ;;  %v2930_v54 = vld [vmem:[#allocation6 + $0x4c] ss:$16 sps:$4 sm:$0xff]  }
 0x2be   :  { %1777 = vmatpush1.bf16.msra.mxu1 %v2916_v55  ;;  %v2928_v55 = vld [vmem:[#allocation6 + $0x48] ss:$16 sps:$4 sm:$0xff]  }
 0x2bf   :  { %1778 = vmatprep.subr.bf16.mxu1 %v2921_v56  ;;  %v2933_v56 = vld [vmem:[#allocation6 + $0x6c] ss:$16 sps:$4 sm:$0xff]  }
 0x2c2   :  { %1779 = vmatpush1.bf16.msra.mxu1 %v2919_v57  ;;  %v2931_v57 = vld [vmem:[#allocation6 + $0x68] ss:$16 sps:$4 sm:$0xff]  }
 0x2c3   :  { %1789 = vmatprep.subr.bf16.mxu1 %v2924_v58  ;;  %v2936_v58 = vld [vmem:[#allocation6 + $0x8c] ss:$16 sps:$4 sm:$0xff]  }
 0x358   :  { %v2633_v4 = vpop.f32.mrb[8].mxu1 }
 0x359   :  { %v2634_v6 = vpop.f32.mrb[9].mxu1 }
 0x35a   :  { %v2635_v7 = vadd.f32 %v2634_v6, %v2633_v4  ;;  %v2636_v8 = vpop.f32.mrb[10].mxu1  ;;  %v2982_v4 = vld [vmem:[#allocation7 + $0x40] ss:$8 sps:$4 sm:$0xff]   ;;  %v2985_v6 = vld [vmem:[#allocation7 + $0x50] ss:$8 sps:$4 sm:$0xff]  }
 0x35b   :  { %v2637_v9 = vpop.f32.mrb[11].mxu1  ;;  %2243 = vmatpush1.bf16.msra.mxu0 %v2982_v4  ;;  %v2988_v8 = vld [vmem:[#allocation7 + $0x60] ss:$8 sps:$4 sm:$0xff]   ;;  %v2951_v4 = vld [vmem:[#allocation6 + $0x12c] ss:$16 sps:$4 sm:$0xff]  }
 0x35c   :  { %v3426_v10 = vadd.f32 %v2635_v7, %v2471_v5  ;;  %v2987_v5 = vld [vmem:[#allocation7 + $0x54] ss:$8 sps:$4 sm:$0xff]   ;;  %v2990_v7 = vld [vmem:[#allocation7 + $0x64] ss:$8 sps:$4 sm:$0xff]  }
 0x35d   :  { %2244 = vmatprep.subr.bf16.mxu0 %v2987_v5  ;;  %v2993_v9 = vld [vmem:[#allocation7 + $0x74] ss:$8 sps:$4 sm:$0xff]   ;;  %v2949_v5 = vld [vmem:[#allocation6 + $0x128] ss:$16 sps:$4 sm:$0xff]  }
 0x35e   :  { %v1270_v11 = vmul.f32 0.5, %v3426_v10  ;;  %1264 = vst.msk [vmem:[%s3502_s15] sm:$0xff] %vm1263_vm0, %v3426_v10 }
 0x35f   :  { %2245 = vmatpush1.bf16.msra.mxu0 %v2985_v6  ;;  %v2954_v6 = vld [vmem:[#allocation6 + $0x14c] ss:$16 sps:$4 sm:$0xff]  }
 0x360   :  { %v1271_v12 = vmul.f32 1.442695, %v1270_v11  ;;  %2246 = vmatprep.subr.bf16.mxu0 %v2990_v7  ;;  %v2996_v11 = vld [vmem:[#allocation7 + $0x84] ss:$8 sps:$4 sm:$0xff]   ;;  %v2952_v7 = vld [vmem:[#allocation6 + $0x148] ss:$16 sps:$4 sm:$0xff]  }
 0x362   :  { %3066 = vpow2.f32 %v1271_v12  ;;  %v2994_v12 = vld [vmem:[#allocation7 + $0x80] ss:$8 sps:$4 sm:$0xff]  }
 0x363   :  { %2247 = vmatpush1.bf16.msra.mxu0 %v2988_v8  ;;  %v2957_v8 = vld [vmem:[#allocation6 + $0x16c] ss:$16 sps:$4 sm:$0xff]  }
 0x364   :  { %2248 = vmatprep.subr.bf16.mxu0 %v2993_v9  ;;  %v2955_v9 = vld [vmem:[#allocation6 + $0x168] ss:$16 sps:$4 sm:$0xff]  }
 0x36c   :  { %v3067_v19 = vpop.eup %3066 }
 0x36d   :  { %v1278_v21 = vmul.f32 %v3067_v19, %v1276_v17  ;;  %v3005_v17 = vld [vmem:[#allocation7 + $0xb4] ss:$8 sps:$4 sm:$0xff]   ;;  %v1285_v19 = vld [vmem:[%s3495_s8] ss:$2 sm:$0x3] }
 0x36e   :  { %v1295_v22 = vrot.slane %v1285_v19, %v3381_v51  ;;  %v1299_v23 = vrot.slane %v1285_v19, %v3389_v53  ;;  %v3012_v19 = vld [vmem:[#allocation7 + $0xe0] ss:$8 sps:$4 sm:$0xff]  }
 0x36f   :  { %1280 = vrot.lane.b32.xlu0 %v1278_v21, %s3181_s7  ;;  %v1284_v21 = vld [vmem:[%s3496_s9] sm:$0x3] }
 0x370   :  { %v1308_v29 = vrot.slane %v1284_v21, %v3381_v51  ;;  %v1312_v31 = vrot.slane %v1284_v21, %v3389_v53  ;;  %v3015_v21 = vld [vmem:[#allocation7 + $0xf0] ss:$8 sps:$4 sm:$0xff]  }
 0x373   :  { %1266 = vrot.lane.b32.xlu0 %v3426_v10, %s3181_s7 }
 0x3e1   :  { %v1281_v46 = vpop.permute.xlu0 %1280 }
 0x3e2   :  { %v1283_v47 = vadd.f32 %v1281_v46, %v3426_v10  ;;  %v2991_v10 = vld [vmem:[#allocation7 + $0x70] ss:$8 sps:$4 sm:$0xff]  }
 0x3e3   :  { %2249 = vmatpush1.bf16.msra.mxu0 %v2991_v10  ;;  %v2960_v10 = vld [vmem:[#allocation6 + $0x18c] ss:$16 sps:$4 sm:$0xff]  }
 0x3e4   :  { %1288 = vperm.xlu1 %2663, %v1283_v47   ;;  %2250 = vmatprep.subr.bf16.mxu0 %v2996_v11  ;;  %v2958_v11 = vld [vmem:[#allocation6 + $0x188] ss:$16 sps:$4 sm:$0xff]  }
 0x3e5   :  { %v1267_v52 = vpop.permute.xlu0 %1266 }
 0x3e6   :  { %1269 = vst.msk [vmem:[%s3503_s16] sm:$0xff] %vm1263_vm0, %v1267_v52  ;;  %v2925_v52 = vld [vmem:[#allocation6 + $0x28] ss:$16 sps:$4 sm:$0xff]  }
 0x3e7   :  { %2251 = vmatpush1.bf16.msra.mxu0 %v2994_v12  ;;  %v2963_v12 = vld [vmem:[#allocation6 + $0x1ac] ss:$16 sps:$4 sm:$0xff]  }
 0x3e8   :  { %2664 = vset.pattern.permute.xlu1 %v3180_v14  ;;  %v2997_v14 = vld [vmem:[#allocation7 + $0x90] ss:$8 sps:$4 sm:$0xff]   ;;  %2252 = vmatprep.subr.bf16.mxu0 %v2999_v13 }
 0x3e9   :  { %1320 = vperm.xlu1 %2664, %v1283_v47   ;;  %v2961_v13 = vld [vmem:[#allocation6 + $0x1a8] ss:$16 sps:$4 sm:$0xff]  }
 0x3eb   :  { %2253 = vmatpush1.bf16.msra.mxu0 %v2997_v14  ;;  %v2966_v14 = vld [vmem:[#allocation6 + $0x1cc] ss:$16 sps:$4 sm:$0xff]  }
 0x3ec   :  { %2254 = vmatprep.subr.bf16.mxu0 %v3002_v15  ;;  %v2964_v15 = vld [vmem:[#allocation6 + $0x1c8] ss:$16 sps:$4 sm:$0xff]  }
 0x3ef   :  { %2255 = vmatpush1.bf16.msra.mxu0 %v3000_v16  ;;  %v2969_v16 = vld [vmem:[#allocation6 + $0x1ec] ss:$16 sps:$4 sm:$0xff]  }
 0x3f0   :  { %2256 = vmatprep.subr.bf16.mxu0 %v3005_v17  ;;  %v2967_v17 = vld [vmem:[#allocation6 + $0x1e8] ss:$16 sps:$4 sm:$0xff]  }
 0x3f3   :  { %2257 = vmatpush1.bf16.msra.mxu0 %v3003_v18  ;;  %v3014_v18 = vld [vmem:[#allocation7 + $0xe4] ss:$8 sps:$4 sm:$0xff]  }
 0x3f4   :  { %2258 = vmatprep.subr.bf16.mxu0 %v3008_v20  ;;  %v3017_v20 = vld [vmem:[#allocation7 + $0xf4] ss:$8 sps:$4 sm:$0xff]  }
 0x3f7   :  { %2259 = vmatpush1.bf16.msra.mxu0 %v3006_v24 }
 0x3f8   :  { %2260 = vmatprep.subr.bf16.mxu0 %v3011_v26 }
 0x3fb   :  { %2261 = vmatpush1.bf16.msra.mxu0 %v3009_v36 }
 0x3fc   :  { %2262 = vmatprep.subr.bf16.mxu0 %v3014_v18 }
 0x3ff   :  { %2263 = vmatpush1.bf16.msra.mxu0 %v3012_v19  ;;  %v1911_v19 = vrot.slane %v1902_v50, %v3389_v53 }
 0x400   :  { %2264 = vmatprep.subr.bf16.mxu0 %v3017_v20 }
 0x403   :  { %2265 = vmatpush1.bf16.msra.mxu0 %v3015_v21 }
 0x463   :  { %v1289_v27 = vpop.permute.xlu1 %1288 }
 0x464   :  { %v1302_v32 = vmul.f32 %v1295_v22, %v1289_v27  ;;  %v1303_v33 = vmul.f32 %v1299_v23, %v1289_v27  ;;  %v3020_v22 = vld [vmem:[#allocation7 + $0x104] ss:$8 sps:$4 sm:$0xff]   ;;  %v3464_v23 = vld [vmem:[%s3498_s11] sm:$0xf] }
 0x465   :  { %2275 = vmatprep.subr.bf16.mxu0 %v3020_v22  ;;  %v1411_v24 = vrot.slane %v3464_v23, %v3381_v51  ;;  %v1415_v25 = vrot.slane %v3464_v23, %v3389_v53 }
 0x466   :  { %v1315_v38 = vadd.f32 %v1308_v29, %v1302_v32  ;;  %v1316_v39 = vadd.f32 %v1312_v31, %v1303_v33 }
 0x468   :  { %v1321_v37 = vpop.permute.xlu1 %1320 }
 0x469   :  { %v1334_v40 = vmul.f32 %v1327_v34, %v1321_v37  ;;  %v1335_v41 = vmul.f32 %v1331_v35, %v1321_v37  ;;  %v3018_v37 = vld [vmem:[#allocation7 + $0x100] ss:$8 sps:$4 sm:$0xff]  }
 0x46b   :  { %v1336_v42 = vadd.f32 %v1334_v40, %v1315_v38  ;;  %v1337_v43 = vadd.f32 %v1335_v41, %v1316_v39  ;;  %v3023_v39 = vld [vmem:[#allocation7 + $0x114] ss:$8 sps:$4 sm:$0xff]   ;;  %v3021_v40 = vld [vmem:[#allocation7 + $0x110] ss:$8 sps:$4 sm:$0xff]   ;;  %v3026_v41 = vld [vmem:[#allocation7 + $0x124] ss:$8 sps:$4 sm:$0xff]  }
 0x46d   :  { %v1338_v44 = vmax.f32 %v1336_v42, 0.0  ;;  %v1339_v45 = vmax.f32 %v1337_v43, 0.0  ;;  %v3024_v42 = vld [vmem:[#allocation7 + $0x120] ss:$8 sps:$4 sm:$0xff]   ;;  %v3029_v43 = vld [vmem:[#allocation7 + $0x134] ss:$8 sps:$4 sm:$0xff]  }
 0x46f   :  { %v3457_v46 = vpack.c.bf16 %v1338_v44, %v1338_v44  ;;  %v1341_v47 = vpack.c.bf16 %v1339_v45, %v1339_v45  ;;  %v3027_v44 = vld [vmem:[#allocation7 + $0x130] ss:$8 sps:$4 sm:$0xff]   ;;  %v3032_v45 = vld [vmem:[#allocation7 + $0x144] ss:$8 sps:$4 sm:$0xff]  }
 0x471   :  { %1780 = vmatprep.mubr.bf16.mxu1 %v1341_v47 }
 0x472   :  { %1781 = vmatmul.mubr.bf16.vlgmr.msra.gmra.mrb[12].mxu1 %v3457_v46 }
 0x473   :  { %1790 = vmatpush1.bf16.msra.mxu1 %v2922_v48  ;;  %1821 = vmatprep.mubr.bf16.mxu1 %v1341_v47  ;;  %v3035_v47 = vld [vmem:[#allocation7 + $0x154] ss:$8 sps:$4 sm:$0xff]   ;;  %v3033_v48 = vld [vmem:[#allocation7 + $0x150] ss:$8 sps:$4 sm:$0xff]  }
 0x474   :  { %1791 = vmatprep.subr.bf16.mxu1 %v2927_v49  ;;  %v3038_v49 = vld [vmem:[#allocation7 + $0x164] ss:$8 sps:$4 sm:$0xff]  }
 0x477   :  { %1792 = vmatpush1.bf16.msra.mxu1 %v2925_v52  ;;  %v3036_v52 = vld [vmem:[#allocation7 + $0x160] ss:$8 sps:$4 sm:$0xff]  }
 0x478   :  { %1793 = vmatprep.subr.bf16.mxu1 %v2930_v54  ;;  %v3041_v54 = vld [vmem:[#allocation7 + $0x174] ss:$8 sps:$4 sm:$0xff]  }
 0x47b   :  { %1794 = vmatpush1.bf16.msra.mxu1 %v2928_v55  ;;  %v3039_v55 = vld [vmem:[#allocation7 + $0x170] ss:$8 sps:$4 sm:$0xff]  }
 0x47c   :  { %1795 = vmatprep.subr.bf16.mxu1 %v2933_v56  ;;  %v3044_v56 = vld [vmem:[#allocation7 + $0x184] ss:$8 sps:$4 sm:$0xff]  }
 0x47f   :  { %1796 = vmatpush1.bf16.msra.mxu1 %v2931_v57  ;;  %v3042_v57 = vld [vmem:[#allocation7 + $0x180] ss:$8 sps:$4 sm:$0xff]  }
 0x480   :  { %1797 = vmatprep.subr.bf16.mxu1 %v2936_v58  ;;  %v3047_v58 = vld [vmem:[#allocation7 + $0x194] ss:$8 sps:$4 sm:$0xff]  }
 0x483   :  { %1798 = vmatpush1.bf16.msra.mxu1 %v2934_v59  ;;  %v3045_v59 = vld [vmem:[#allocation7 + $0x190] ss:$8 sps:$4 sm:$0xff]  }
 0x484   :  { %1799 = vmatprep.subr.bf16.mxu1 %v2939_v60  ;;  %v3050_v60 = vld [vmem:[#allocation7 + $0x1a4] ss:$8 sps:$4 sm:$0xff]  }
 0x487   :  { %1800 = vmatpush1.bf16.msra.mxu1 %v2937_v61  ;;  %v3048_v61 = vld [vmem:[#allocation7 + $0x1a0] ss:$8 sps:$4 sm:$0xff]  }
 0x488   :  { %1801 = vmatprep.subr.bf16.mxu1 %v2942_v62  ;;  %v3053_v62 = vld [vmem:[#allocation7 + $0x1b4] ss:$8 sps:$4 sm:$0xff]  }
 0x48b   :  { %1802 = vmatpush1.bf16.msra.mxu1 %v2940_v63  ;;  %v3051_v63 = vld [vmem:[#allocation7 + $0x1b0] ss:$8 sps:$4 sm:$0xff]  }
 0x48c   :  { %1803 = vmatprep.subr.bf16.mxu1 %v2945_v0  ;;  %v3056_v0 = vld [vmem:[#allocation7 + $0x1c4] ss:$8 sps:$4 sm:$0xff]  }
 0x48f   :  { %1804 = vmatpush1.bf16.msra.mxu1 %v2943_v1  ;;  %v3054_v1 = vld [vmem:[#allocation7 + $0x1c0] ss:$8 sps:$4 sm:$0xff]  }
 0x490   :  { %1805 = vmatprep.subr.bf16.mxu1 %v2948_v2  ;;  %v3059_v2 = vld [vmem:[#allocation7 + $0x1d4] ss:$8 sps:$4 sm:$0xff]  }
 0x493   :  { %1806 = vmatpush1.bf16.msra.mxu1 %v2946_v3  ;;  %v3057_v3 = vld [vmem:[#allocation7 + $0x1d0] ss:$8 sps:$4 sm:$0xff]  }
 0x494   :  { %1807 = vmatprep.subr.bf16.mxu1 %v2951_v4  ;;  %v3062_v4 = vld [vmem:[#allocation7 + $0x1e4] ss:$8 sps:$4 sm:$0xff]  }
 0x497   :  { %1808 = vmatpush1.bf16.msra.mxu1 %v2949_v5  ;;  %v1419_v5 = vrot.slane %v3464_v23, %v186_v28 }
 0x498   :  { %1809 = vmatprep.subr.bf16.mxu1 %v2954_v6  ;;  %v1423_v6 = vrot.slane %v3464_v23, %v190_v30  ;;  %v1907_v30 = vrot.slane %v1902_v50, %v3381_v51 }
 0x49b   :  { %1810 = vmatpush1.bf16.msra.mxu1 %v2952_v7  ;;  %v3060_v7 = vld [vmem:[#allocation7 + $0x1e0] ss:$8 sps:$4 sm:$0xff]  }
 0x49c   :  { %1811 = vmatprep.subr.bf16.mxu1 %v2957_v8  ;;  %v3065_v8 = vld [vmem:[#allocation7 + $0x1f4] ss:$8 sps:$4 sm:$0xff]  }
 0x49f   :  { %1812 = vmatpush1.bf16.msra.mxu1 %v2955_v9 }
 0x4a0   :  { %1813 = vmatprep.subr.bf16.mxu1 %v2960_v10 }
 0x4a3   :  { %1814 = vmatpush1.bf16.msra.mxu1 %v2958_v11 }
 0x4a4   :  { %1815 = vmatprep.subr.bf16.mxu1 %v2963_v12 }
 0x4a7   :  { %1816 = vmatpush1.bf16.msra.mxu1 %v2961_v13 }
 0x4a8   :  { %1817 = vmatprep.subr.bf16.mxu1 %v2966_v14  ;;  %v3063_v14 = vld [vmem:[#allocation7 + $0x1f0] ss:$8 sps:$4 sm:$0xff]  }
 0x4ab   :  { %1818 = vmatpush1.bf16.msra.mxu1 %v2964_v15 }
 0x4ac   :  { %1819 = vmatprep.subr.bf16.mxu1 %v2969_v16 }
 0x4af   :  { %1820 = vmatpush1.bf16.msra.mxu1 %v2967_v17 }
 0x4b2   :  { %1822 = vmatmul.mubr.bf16.vlgmr.msra.gmra.mrb[16].mxu1 %v3457_v46  ;;  %v3030_v46 = vld [vmem:[#allocation7 + $0x140] ss:$8 sps:$4 sm:$0xff]  }
 0x545   :  { %v1782_v26 = vpop.f32.mrb[12].mxu1 }
 0x546   :  { %v1783_v27 = vadd.f32 %v1782_v26, %v1411_v24  ;;  %v1784_v29 = vpop.f32.mrb[13].mxu1 }
 0x547   :  { %v1785_v31 = vadd.f32 %v1784_v29, %v1415_v25  ;;  %v1786_v32 = vpop.f32.mrb[14].mxu1 }
 0x548   :  { %v1830_v33 = vmax.f32 %v1783_v27, 0.0  ;;  %v1787_v34 = vpop.f32.mrb[15].mxu1 }
 0x549   :  { %v1831_v35 = vmax.f32 %v1785_v31, 0.0 }
 0x54a   :  { %v1834_v38 = vpack.c.bf16 %v1830_v33, %v1830_v33 }
 0x54b   :  { %v1835_v36 = vpack.c.bf16 %v1831_v35, %v1831_v35 }
 0x54d   :  { %2266 = vmatprep.mubr.bf16.mxu0 %v1835_v36 }
 0x54e   :  { %2267 = vmatmul.mubr.bf16.vlgmr.msra.gmra.mrb[4].mxu0 %v1834_v38 }
 0x54f   :  { %2276 = vmatpush1.bf16.msra.mxu0 %v3018_v37 }
 0x550   :  { %2277 = vmatprep.subr.bf16.mxu0 %v3023_v39 }
 0x553   :  { %2278 = vmatpush1.bf16.msra.mxu0 %v3021_v40 }
 0x554   :  { %2279 = vmatprep.subr.bf16.mxu0 %v3026_v41 }
 0x557   :  { %2280 = vmatpush1.bf16.msra.mxu0 %v3024_v42 }
 0x558   :  { %2281 = vmatprep.subr.bf16.mxu0 %v3029_v43 }
 0x55b   :  { %2282 = vmatpush1.bf16.msra.mxu0 %v3027_v44 }
 0x55c   :  { %2283 = vmatprep.subr.bf16.mxu0 %v3032_v45 }
 0x55f   :  { %2284 = vmatpush1.bf16.msra.mxu0 %v3030_v46 }
 0x560   :  { %2285 = vmatprep.subr.bf16.mxu0 %v3035_v47 }
 0x563   :  { %2286 = vmatpush1.bf16.msra.mxu0 %v3033_v48 }
 0x564   :  { %2287 = vmatprep.subr.bf16.mxu0 %v3038_v49 }
 0x567   :  { %2288 = vmatpush1.bf16.msra.mxu0 %v3036_v52 }
 0x568   :  { %2289 = vmatprep.subr.bf16.mxu0 %v3041_v54 }
 0x56b   :  { %2290 = vmatpush1.bf16.msra.mxu0 %v3039_v55 }
 0x56c   :  { %2291 = vmatprep.subr.bf16.mxu0 %v3044_v56 }
 0x56f   :  { %2292 = vmatpush1.bf16.msra.mxu0 %v3042_v57 }
 0x570   :  { %2293 = vmatprep.subr.bf16.mxu0 %v3047_v58 }
 0x573   :  { %2294 = vmatpush1.bf16.msra.mxu0 %v3045_v59 }
 0x574   :  { %2295 = vmatprep.subr.bf16.mxu0 %v3050_v60 }
 0x577   :  { %2296 = vmatpush1.bf16.msra.mxu0 %v3048_v61 }
 0x578   :  { %2297 = vmatprep.subr.bf16.mxu0 %v3053_v62 }
 0x57b   :  { %2298 = vmatpush1.bf16.msra.mxu0 %v3051_v63 }
 0x57c   :  { %2299 = vmatprep.subr.bf16.mxu0 %v3056_v0 }
 0x57f   :  { %2300 = vmatpush1.bf16.msra.mxu0 %v3054_v1 }
 0x580   :  { %2301 = vmatprep.subr.bf16.mxu0 %v3059_v2 }
 0x583   :  { %2302 = vmatpush1.bf16.msra.mxu0 %v3057_v3 }
 0x584   :  { %2303 = vmatprep.subr.bf16.mxu0 %v3062_v4 }
 0x585   :  { %v1823_v9 = vpop.f32.mrb[16].mxu1 }
 0x586   :  { %v1824_v10 = vadd.f32 %v1823_v9, %v1419_v5  ;;  %v1825_v11 = vpop.f32.mrb[17].mxu1 }
 0x587   :  { %v1826_v12 = vadd.f32 %v1825_v11, %v1423_v6  ;;  %v1827_v13 = vpop.f32.mrb[18].mxu1  ;;  %2304 = vmatpush1.bf16.msra.mxu0 %v3060_v7 }
 0x588   :  { %v1832_v15 = vmax.f32 %v1824_v10, 0.0  ;;  %v1828_v16 = vpop.f32.mrb[19].mxu1  ;;  %2305 = vmatprep.subr.bf16.mxu0 %v3065_v8 }
 0x589   :  { %v1833_v17 = vmax.f32 %v1826_v12, 0.0 }
 0x58a   :  { %v1836_v18 = vpack.c.bf16 %v1832_v15, %v1832_v15 }
 0x58b   :  { %v1837_v28 = vpack.c.bf16 %v1833_v17, %v1833_v17  ;;  %2306 = vmatpush1.bf16.msra.mxu0 %v3063_v14 }
 0x58d   :  { %2307 = vmatprep.mubr.bf16.mxu0 %v1837_v28 }
 0x58e   :  { %2308 = vmatmul.mubr.bf16.vlgmr.msra.gmra.mrb[4].mxu0 %v1836_v18 }
 0x661   :  { %v2309_v20 = vpop.f32.mrb[4].mxu0 }
 0x662   :  { %v2641_v21 = vadd.f32 %v2309_v20, %v1907_v30  ;;  %v2311_v22 = vpop.f32.mrb[5].mxu0 }
 0x663   :  { %v2642_v23 = vadd.f32 %v2311_v22, %v1911_v19  ;;  %v2313_v24 = vpop.f32.mrb[6].mxu0 }
 0x664   :  { %v2316_v25 = vsub.f32 0.0, %v2641_v21  ;;  %v2314_v26 = vpop.f32.mrb[7].mxu0 }
 0x665   :  { %v2317_v27 = vsub.f32 0.0, %v2642_v23 }
 0x666   :  { %v2318_v29 = vmul.f32 1.442695, %v2316_v25 }
 0x667   :  { %v2320_v31 = vmul.f32 1.442695, %v2317_v27 }
 0x668   :  { %3068 = vpow2.f32 %v2318_v29 }
 0x669   :  { %3070 = vpow2.f32 %v2320_v31 }
 0x672   :  { %v3069_v32 = vpop.eup %3068 }
 0x673   :  { %v3071_v33 = vpop.eup %3070  ;;  %v2322_v34 = vadd.f32 1.0, %v3069_v32 }
 0x674   :  { %v2323_v35 = vadd.f32 1.0, %v3071_v33 }
 0x675   :  { %3072 = vrcp.f32 %v2322_v34 }
 0x676   :  { %3074 = vrcp.f32 %v2323_v35 }
 0x67f   :  { %v3073_v51 = vpop.eup %3072 }
 0x680   :  { %v3075_v53 = vpop.eup %3074  ;;  %2326 = vst [vmem:[%s3501_s14] sm:$0xff] %v3073_v51 }
 0x681   :  { %2327 = vst [vmem:[%s3501_s14 + $0x8] sm:$0xff] %v3075_v53 }
 0x682   :  { %2340 = vsyncpa [#allocation3], 1 }
 0x683   :  { %2341 = vsyncpa [#allocation5], 1 }
 0x684   :  { %2342 = vsyncpa [#allocation8], 1 }

</bundles_post_ra>
